<compile_context>
chip_gen: v7x
topology: tpu7x:2x2x1
jax: 0.10.0
libtpu: 0.0.40
codegen_flags: <defaults>
</compile_context>

<pallas_src>
import functools

import jax
import jax.numpy as jnp
from jax.experimental import pallas as pl
from jax.experimental.pallas import tpu as pltpu


def _decomp_kernel(x_ref, halo_ref, res_ref, mean_ref, win_ref, *,
                   kernel_size, pad, rows_per_chunk):
    # x_ref:    (1, TL, D)       current time tile of x
    # halo_ref: (1, 2*pad, D)    rows [0:pad) = the pad rows preceding the tile,
    #                            rows [pad:2*pad) = the pad rows following it
    #                            (already replicate-clamped at sequence ends)
    # win_ref:  (1, TL+2*pad, D) VMEM scratch: [prev halo | x tile | next halo]
    k = kernel_size
    p = pad
    TL = x_ref.shape[1]
    D = x_ref.shape[2]

    # Assemble the replicate-padded window once; all k taps read from this ref
    # (no k-fold slicing of a materialised value -> no extra VMEM copies).
    win_ref[:, p:p + TL, :] = x_ref[...]
    win_ref[:, :p, :] = halo_ref[:, :p, :]
    win_ref[:, p + TL:, :] = halo_ref[:, p:, :]

    inv_k = 1.0 / k
    # Chunk the time axis so the f32 accumulator stays register-resident; a
    # full-tile accumulator would spill and make the tap loop store-bound.
    r = 0
    while r < TL:
        cs = min(rows_per_chunk, TL - r)
        acc = jnp.zeros((1, cs, D), dtype=jnp.float32)
        for j in range(k):  # k static shifted adds: vld + VALU only
            acc = acc + win_ref[:, r + j:r + j + cs, :].astype(jnp.float32)
        mean = acc * inv_k
        mean_ref[:, r:r + cs, :] = mean.astype(mean_ref.dtype)
        res_ref[:, r:r + cs, :] = (
            x_ref[:, r:r + cs, :].astype(jnp.float32) - mean
        ).astype(res_ref.dtype)
        r += cs


def _pick_time_tile(L, target=512, minimum=128):
    """Largest divisor of L that is <= target, >= minimum and a multiple of 8.

    Falls back to the full sequence (one tile) if no such divisor exists —
    still correct, just a bigger VMEM block for very long sequences.
    """
    if L <= target:
        return L
    for cand in range(target, minimum - 1, -8):
        if L % cand == 0:
            return cand
    return L


def series_decomp(x, kernel_size, time_tile=None):
    """Pallas equivalent of series_decomp(kernel_size).forward(x).

    x: (B, L, D) float array.  Returns (res, moving_mean), both (B, L, D).
    kernel_size must be odd (the PyTorch module would shape-mismatch otherwise).
    """
    if kernel_size < 1 or kernel_size % 2 == 0:
        raise ValueError("series_decomp requires an odd kernel_size >= 1")
    B, L, D = x.shape
    p = (kernel_size - 1) // 2
    if p == 0:  # kernel_size == 1: moving average is the identity
        return jnp.zeros_like(x), x

    if (time_tile is not None and L % time_tile == 0
            and (time_tile == L or time_tile % 8 == 0)):
        TL = time_tile
    else:
        TL = _pick_time_tile(L)
    NT = L // TL

    # Tiny per-tile halo: the p rows before and after each time tile, with
    # replicate clamping at the sequence ends (index clamp == replicate pad).
    t0 = jnp.arange(NT, dtype=jnp.int32) * TL
    offs = jnp.arange(p, dtype=jnp.int32)
    prev_idx = t0[:, None] - p + offs[None, :]            # (NT, p)
    next_idx = t0[:, None] + TL + offs[None, :]           # (NT, p)
    idx = jnp.clip(jnp.concatenate([prev_idx, next_idx], axis=1), 0, L - 1)
    halo = jnp.take(x, idx.reshape(-1), axis=1)           # (B, NT*2p, D)
    halo = halo.reshape(B * NT, 2 * p, D)

    rows_per_chunk = 32 if D <= 256 else (16 if D <= 512 else 8)

    kernel = functools.partial(
        _decomp_kernel, kernel_size=kernel_size, pad=p,
        rows_per_chunk=rows_per_chunk)

    res, mean = pl.pallas_call(
        kernel,
        out_shape=(
            jax.ShapeDtypeStruct((B, L, D), x.dtype),
            jax.ShapeDtypeStruct((B, L, D), x.dtype),
        ),
        grid_spec=pltpu.PrefetchScalarGridSpec(
            num_scalar_prefetch=0,
            grid=(B, NT),
            in_specs=[
                pl.BlockSpec((1, TL, D), lambda b, t: (b, t, 0)),
                pl.BlockSpec((1, 2 * p, D), lambda b, t: (b * NT + t, 0, 0)),
            ],
            out_specs=(
                pl.BlockSpec((1, TL, D), lambda b, t: (b, t, 0)),
                pl.BlockSpec((1, TL, D), lambda b, t: (b, t, 0)),
            ),
            scratch_shapes=[pltpu.VMEM((1, TL + 2 * p, D), x.dtype)],
        ),
        compiler_params=pltpu.CompilerParams(
            dimension_semantics=("parallel", "parallel"),
        ),
    )(x, halo)
    return res, mean


def _reference(x, kernel_size):
    """Pure-JAX reference mirroring the PyTorch module semantics."""
    p = (kernel_size - 1) // 2
    front = jnp.repeat(x[:, 0:1, :], p, axis=1)
    end = jnp.repeat(x[:, -1:, :], p, axis=1)
    xpad = jnp.concatenate([front, x, end], axis=1)
    L = x.shape[1]
    windows = jnp.stack(
        [xpad[:, j:j + L, :] for j in range(kernel_size)], axis=0)
    mean = jnp.mean(windows, axis=0)
    return x - mean, mean


if __name__ == "__main__":
    key = jax.random.PRNGKey(0)
    kernel_size = 25  # standard Autoformer moving-average window

    # Config 1: single time-tile path (lane-dense D).
    B, L, D = 2, 96, 128
    x = jax.random.normal(key, (B, L, D), dtype=jnp.float32)
    res, mean = series_decomp(x, kernel_size)
    jax.block_until_ready((res, mean))
    res_ref, mean_ref = _reference(x, kernel_size)
    assert jnp.allclose(res, res_ref, atol=1e-5, rtol=1e-5)
    assert jnp.allclose(mean, mean_ref, atol=1e-5, rtol=1e-5)

    # Config 2: multi-tile time axis (exercises the halo / tiled-grid path).
    x2 = jax.random.normal(jax.random.fold_in(key, 1), (2, 128, 64),
                           dtype=jnp.float32)
    res2, mean2 = series_decomp(x2, kernel_size, time_tile=64)
    jax.block_until_ready((res2, mean2))
    res2_ref, mean2_ref = _reference(x2, kernel_size)
    assert jnp.allclose(res2, res2_ref, atol=1e-5, rtol=1e-5)
    assert jnp.allclose(mean2, mean2_ref, atol=1e-5, rtol=1e-5)

    print("KERNEL_OK")
</pallas_src>

<mosaic_0001>
module attributes {stable_mosaic.version = 11 : i64} {
  func.func @_decomp_kernel(%arg0: i32, %arg1: i32, %arg2: memref<1x96x128xf32, #tpu.memory_space<vmem>>, %arg3: memref<1x24x128xf32, #tpu.memory_space<vmem>>, %arg4: memref<1x96x128xf32, #tpu.memory_space<vmem>>, %arg5: memref<1x96x128xf32, #tpu.memory_space<vmem>>, %arg6: memref<1x120x128xf32, #tpu.memory_space<vmem>>) attributes {dimension_semantics = [#tpu.dimension_semantics<parallel>, #tpu.dimension_semantics<parallel>], iteration_bounds = array<i64: 2, 1>, scalar_prefetch = 0 : i64, scratch_operands = 1 : i64, tpu.core_type = #tpu.core_type<tc>, window_params = [{transform_indices = @transform_0, window_bounds = array<i64: 1, 96, 128>}, {transform_indices = @transform_1, window_bounds = array<i64: 1, 24, 128>}, {transform_indices = @transform_2, window_bounds = array<i64: 1, 96, 128>}, {transform_indices = @transform_3, window_bounds = array<i64: 1, 96, 128>}]} {
    %c0 = arith.constant 0 : index
    %c0_0 = arith.constant 0 : index
    %c0_1 = arith.constant 0 : index
    %0 = vector.load %arg2[%c0, %c0_0, %c0_1] : memref<1x96x128xf32, #tpu.memory_space<vmem>>, vector<1x96x128xf32>
    %c0_2 = arith.constant 0 : index
    %c12 = arith.constant 12 : index
    %c0_3 = arith.constant 0 : index
    %1 = vector.load %arg6[%c0_2, %c12, %c0_3] : memref<1x120x128xf32, #tpu.memory_space<vmem>>, vector<1x96x128xf32>
    tpu.vector_store %arg6[%c0_2, %c12, %c0_3], %0 {strides = array<i32>} : memref<1x120x128xf32, #tpu.memory_space<vmem>>, vector<1x96x128xf32>,
    %c0_4 = arith.constant 0 : index
    %c0_5 = arith.constant 0 : index
    %c0_6 = arith.constant 0 : index
    %2 = vector.load %arg3[%c0_4, %c0_5, %c0_6] : memref<1x24x128xf32, #tpu.memory_space<vmem>>, vector<1x12x128xf32>
    %c0_7 = arith.constant 0 : index
    %c0_8 = arith.constant 0 : index
    %c0_9 = arith.constant 0 : index
    %3 = vector.load %arg6[%c0_7, %c0_8, %c0_9] : memref<1x120x128xf32, #tpu.memory_space<vmem>>, vector<1x12x128xf32>
    tpu.vector_store %arg6[%c0_7, %c0_8, %c0_9], %2 {strides = array<i32>} : memref<1x120x128xf32, #tpu.memory_space<vmem>>, vector<1x12x128xf32>,
    %c0_10 = arith.constant 0 : index
    %c12_11 = arith.constant 12 : index
    %c0_12 = arith.constant 0 : index
    %4 = vector.load %arg3[%c0_10, %c12_11, %c0_12] : memref<1x24x128xf32, #tpu.memory_space<vmem>>, vector<1x12x128xf32>
    %c0_13 = arith.constant 0 : index
    %c108 = arith.constant 108 : index
    %c0_14 = arith.constant 0 : index
    %5 = vector.load %arg6[%c0_13, %c108, %c0_14] : memref<1x120x128xf32, #tpu.memory_space<vmem>>, vector<1x12x128xf32>
    tpu.vector_store %arg6[%c0_13, %c108, %c0_14], %4 {strides = array<i32>} : memref<1x120x128xf32, #tpu.memory_space<vmem>>, vector<1x12x128xf32>,
    %cst = arith.constant 0.000000e+00 : f32
    %6 = vector.broadcast %cst : f32 to vector<1x32x128xf32>
    %c0_15 = arith.constant 0 : index
    %c0_16 = arith.constant 0 : index
    %c0_17 = arith.constant 0 : index
    %7 = vector.load %arg6[%c0_15, %c0_16, %c0_17] : memref<1x120x128xf32, #tpu.memory_space<vmem>>, vector<1x32x128xf32>
    %8 = arith.addf %6, %7 : vector<1x32x128xf32>
    %c0_18 = arith.constant 0 : index
    %c1 = arith.constant 1 : index
    %c0_19 = arith.constant 0 : index
    %9 = vector.load %arg6[%c0_18, %c1, %c0_19] : memref<1x120x128xf32, #tpu.memory_space<vmem>>, vector<1x32x128xf32>
    %10 = arith.addf %8, %9 : vector<1x32x128xf32>
    %c0_20 = arith.constant 0 : index
    %c2 = arith.constant 2 : index
    %c0_21 = arith.constant 0 : index
    %11 = vector.load %arg6[%c0_20, %c2, %c0_21] : memref<1x120x128xf32, #tpu.memory_space<vmem>>, vector<1x32x128xf32>
    %12 = arith.addf %10, %11 : vector<1x32x128xf32>
    %c0_22 = arith.constant 0 : index
    %c3 = arith.constant 3 : index
    %c0_23 = arith.constant 0 : index
    %13 = vector.load %arg6[%c0_22, %c3, %c0_23] : memref<1x120x128xf32, #tpu.memory_space<vmem>>, vector<1x32x128xf32>
    %14 = arith.addf %12, %13 : vector<1x32x128xf32>
    %c0_24 = arith.constant 0 : index
    %c4 = arith.constant 4 : index
    %c0_25 = arith.constant 0 : index
    %15 = vector.load %arg6[%c0_24, %c4, %c0_25] : memref<1x120x128xf32, #tpu.memory_space<vmem>>, vector<1x32x128xf32>
    %16 = arith.addf %14, %15 : vector<1x32x128xf32>
    %c0_26 = arith.constant 0 : index
    %c5 = arith.constant 5 : index
    %c0_27 = arith.constant 0 : index
    %17 = vector.load %arg6[%c0_26, %c5, %c0_27] : memref<1x120x128xf32, #tpu.memory_space<vmem>>, vector<1x32x128xf32>
    %18 = arith.addf %16, %17 : vector<1x32x128xf32>
    %c0_28 = arith.constant 0 : index
    %c6 = arith.constant 6 : index
    %c0_29 = arith.constant 0 : index
    %19 = vector.load %arg6[%c0_28, %c6, %c0_29] : memref<1x120x128xf32, #tpu.memory_space<vmem>>, vector<1x32x128xf32>
    %20 = arith.addf %18, %19 : vector<1x32x128xf32>
    %c0_30 = arith.constant 0 : index
    %c7 = arith.constant 7 : index
    %c0_31 = arith.constant 0 : index
    %21 = vector.load %arg6[%c0_30, %c7, %c0_31] : memref<1x120x128xf32, #tpu.memory_space<vmem>>, vector<1x32x128xf32>
    %22 = arith.addf %20, %21 : vector<1x32x128xf32>
    %c0_32 = arith.constant 0 : index
    %c8 = arith.constant 8 : index
    %c0_33 = arith.constant 0 : index
    %23 = vector.load %arg6[%c0_32, %c8, %c0_33] : memref<1x120x128xf32, #tpu.memory_space<vmem>>, vector<1x32x128xf32>
    %24 = arith.addf %22, %23 : vector<1x32x128xf32>
    %c0_34 = arith.constant 0 : index
    %c9 = arith.constant 9 : index
    %c0_35 = arith.constant 0 : index
    %25 = vector.load %arg6[%c0_34, %c9, %c0_35] : memref<1x120x128xf32, #tpu.memory_space<vmem>>, vector<1x32x128xf32>
    %26 = arith.addf %24, %25 : vector<1x32x128xf32>
    %c0_36 = arith.constant 0 : index
    %c10 = arith.constant 10 : index
    %c0_37 = arith.constant 0 : index
    %27 = vector.load %arg6[%c0_36, %c10, %c0_37] : memref<1x120x128xf32, #tpu.memory_space<vmem>>, vector<1x32x128xf32>
    %28 = arith.addf %26, %27 : vector<1x32x128xf32>
    %c0_38 = arith.constant 0 : index
    %c11 = arith.constant 11 : index
    %c0_39 = arith.constant 0 : index
    %29 = vector.load %arg6[%c0_38, %c11, %c0_39] : memref<1x120x128xf32, #tpu.memory_space<vmem>>, vector<1x32x128xf32>
    %30 = arith.addf %28, %29 : vector<1x32x128xf32>
    %c0_40 = arith.constant 0 : index
    %c12_41 = arith.constant 12 : index
    %c0_42 = arith.constant 0 : index
    %31 = vector.load %arg6[%c0_40, %c12_41, %c0_42] : memref<1x120x128xf32, #tpu.memory_space<vmem>>, vector<1x32x128xf32>
    %32 = arith.addf %30, %31 : vector<1x32x128xf32>
    %c0_43 = arith.constant 0 : index
    %c13 = arith.constant 13 : index
    %c0_44 = arith.constant 0 : index
    %33 = vector.load %arg6[%c0_43, %c13, %c0_44] : memref<1x120x128xf32, #tpu.memory_space<vmem>>, vector<1x32x128xf32>
    %34 = arith.addf %32, %33 : vector<1x32x128xf32>
    %c0_45 = arith.constant 0 : index
    %c14 = arith.constant 14 : index
    %c0_46 = arith.constant 0 : index
    %35 = vector.load %arg6[%c0_45, %c14, %c0_46] : memref<1x120x128xf32, #tpu.memory_space<vmem>>, vector<1x32x128xf32>
    %36 = arith.addf %34, %35 : vector<1x32x128xf32>
    %c0_47 = arith.constant 0 : index
    %c15 = arith.constant 15 : index
    %c0_48 = arith.constant 0 : index
    %37 = vector.load %arg6[%c0_47, %c15, %c0_48] : memref<1x120x128xf32, #tpu.memory_space<vmem>>, vector<1x32x128xf32>
    %38 = arith.addf %36, %37 : vector<1x32x128xf32>
    %c0_49 = arith.constant 0 : index
    %c16 = arith.constant 16 : index
    %c0_50 = arith.constant 0 : index
    %39 = vector.load %arg6[%c0_49, %c16, %c0_50] : memref<1x120x128xf32, #tpu.memory_space<vmem>>, vector<1x32x128xf32>
    %40 = arith.addf %38, %39 : vector<1x32x128xf32>
    %c0_51 = arith.constant 0 : index
    %c17 = arith.constant 17 : index
    %c0_52 = arith.constant 0 : index
    %41 = vector.load %arg6[%c0_51, %c17, %c0_52] : memref<1x120x128xf32, #tpu.memory_space<vmem>>, vector<1x32x128xf32>
    %42 = arith.addf %40, %41 : vector<1x32x128xf32>
    %c0_53 = arith.constant 0 : index
    %c18 = arith.constant 18 : index
    %c0_54 = arith.constant 0 : index
    %43 = vector.load %arg6[%c0_53, %c18, %c0_54] : memref<1x120x128xf32, #tpu.memory_space<vmem>>, vector<1x32x128xf32>
    %44 = arith.addf %42, %43 : vector<1x32x128xf32>
    %c0_55 = arith.constant 0 : index
    %c19 = arith.constant 19 : index
    %c0_56 = arith.constant 0 : index
    %45 = vector.load %arg6[%c0_55, %c19, %c0_56] : memref<1x120x128xf32, #tpu.memory_space<vmem>>, vector<1x32x128xf32>
    %46 = arith.addf %44, %45 : vector<1x32x128xf32>
    %c0_57 = arith.constant 0 : index
    %c20 = arith.constant 20 : index
    %c0_58 = arith.constant 0 : index
    %47 = vector.load %arg6[%c0_57, %c20, %c0_58] : memref<1x120x128xf32, #tpu.memory_space<vmem>>, vector<1x32x128xf32>
    %48 = arith.addf %46, %47 : vector<1x32x128xf32>
    %c0_59 = arith.constant 0 : index
    %c21 = arith.constant 21 : index
    %c0_60 = arith.constant 0 : index
    %49 = vector.load %arg6[%c0_59, %c21, %c0_60] : memref<1x120x128xf32, #tpu.memory_space<vmem>>, vector<1x32x128xf32>
    %50 = arith.addf %48, %49 : vector<1x32x128xf32>
    %c0_61 = arith.constant 0 : index
    %c22 = arith.constant 22 : index
    %c0_62 = arith.constant 0 : index
    %51 = vector.load %arg6[%c0_61, %c22, %c0_62] : memref<1x120x128xf32, #tpu.memory_space<vmem>>, vector<1x32x128xf32>
    %52 = arith.addf %50, %51 : vector<1x32x128xf32>
    %c0_63 = arith.constant 0 : index
    %c23 = arith.constant 23 : index
    %c0_64 = arith.constant 0 : index
    %53 = vector.load %arg6[%c0_63, %c23, %c0_64] : memref<1x120x128xf32, #tpu.memory_space<vmem>>, vector<1x32x128xf32>
    %54 = arith.addf %52, %53 : vector<1x32x128xf32>
    %c0_65 = arith.constant 0 : index
    %c24 = arith.constant 24 : index
    %c0_66 = arith.constant 0 : index
    %55 = vector.load %arg6[%c0_65, %c24, %c0_66] : memref<1x120x128xf32, #tpu.memory_space<vmem>>, vector<1x32x128xf32>
    %56 = arith.addf %54, %55 : vector<1x32x128xf32>
    %cst_67 = arith.constant 4.000000e-02 : f32
    %57 = vector.broadcast %cst_67 : f32 to vector<1x32x128xf32>
    %58 = arith.mulf %56, %57 : vector<1x32x128xf32>
    %c0_68 = arith.constant 0 : index
    %c0_69 = arith.constant 0 : index
    %c0_70 = arith.constant 0 : index
    %59 = vector.load %arg5[%c0_68, %c0_69, %c0_70] : memref<1x96x128xf32, #tpu.memory_space<vmem>>, vector<1x32x128xf32>
    tpu.vector_store %arg5[%c0_68, %c0_69, %c0_70], %58 {strides = array<i32>} : memref<1x96x128xf32, #tpu.memory_space<vmem>>, vector<1x32x128xf32>,
    %c0_71 = arith.constant 0 : index
    %c0_72 = arith.constant 0 : index
    %c0_73 = arith.constant 0 : index
    %60 = vector.load %arg2[%c0_71, %c0_72, %c0_73] : memref<1x96x128xf32, #tpu.memory_space<vmem>>, vector<1x32x128xf32>
    %61 = arith.subf %60, %58 : vector<1x32x128xf32>
    %c0_74 = arith.constant 0 : index
    %c0_75 = arith.constant 0 : index
    %c0_76 = arith.constant 0 : index
    %62 = vector.load %arg4[%c0_74, %c0_75, %c0_76] : memref<1x96x128xf32, #tpu.memory_space<vmem>>, vector<1x32x128xf32>
    tpu.vector_store %arg4[%c0_74, %c0_75, %c0_76], %61 {strides = array<i32>} : memref<1x96x128xf32, #tpu.memory_space<vmem>>, vector<1x32x128xf32>,
    %cst_77 = arith.constant 0.000000e+00 : f32
    %63 = vector.broadcast %cst_77 : f32 to vector<1x32x128xf32>
    %c0_78 = arith.constant 0 : index
    %c32 = arith.constant 32 : index
    %c0_79 = arith.constant 0 : index
    %64 = vector.load %arg6[%c0_78, %c32, %c0_79] : memref<1x120x128xf32, #tpu.memory_space<vmem>>, vector<1x32x128xf32>
    %65 = arith.addf %63, %64 : vector<1x32x128xf32>
    %c0_80 = arith.constant 0 : index
    %c33 = arith.constant 33 : index
    %c0_81 = arith.constant 0 : index
    %66 = vector.load %arg6[%c0_80, %c33, %c0_81] : memref<1x120x128xf32, #tpu.memory_space<vmem>>, vector<1x32x128xf32>
    %67 = arith.addf %65, %66 : vector<1x32x128xf32>
    %c0_82 = arith.constant 0 : index
    %c34 = arith.constant 34 : index
    %c0_83 = arith.constant 0 : index
    %68 = vector.load %arg6[%c0_82, %c34, %c0_83] : memref<1x120x128xf32, #tpu.memory_space<vmem>>, vector<1x32x128xf32>
    %69 = arith.addf %67, %68 : vector<1x32x128xf32>
    %c0_84 = arith.constant 0 : index
    %c35 = arith.constant 35 : index
    %c0_85 = arith.constant 0 : index
    %70 = vector.load %arg6[%c0_84, %c35, %c0_85] : memref<1x120x128xf32, #tpu.memory_space<vmem>>, vector<1x32x128xf32>
    %71 = arith.addf %69, %70 : vector<1x32x128xf32>
    %c0_86 = arith.constant 0 : index
    %c36 = arith.constant 36 : index
    %c0_87 = arith.constant 0 : index
    %72 = vector.load %arg6[%c0_86, %c36, %c0_87] : memref<1x120x128xf32, #tpu.memory_space<vmem>>, vector<1x32x128xf32>
    %73 = arith.addf %71, %72 : vector<1x32x128xf32>
    %c0_88 = arith.constant 0 : index
    %c37 = arith.constant 37 : index
    %c0_89 = arith.constant 0 : index
    %74 = vector.load %arg6[%c0_88, %c37, %c0_89] : memref<1x120x128xf32, #tpu.memory_space<vmem>>, vector<1x32x128xf32>
    %75 = arith.addf %73, %74 : vector<1x32x128xf32>
    %c0_90 = arith.constant 0 : index
    %c38 = arith.constant 38 : index
    %c0_91 = arith.constant 0 : index
    %76 = vector.load %arg6[%c0_90, %c38, %c0_91] : memref<1x120x128xf32, #tpu.memory_space<vmem>>, vector<1x32x128xf32>
    %77 = arith.addf %75, %76 : vector<1x32x128xf32>
    %c0_92 = arith.constant 0 : index
    %c39 = arith.constant 39 : index
    %c0_93 = arith.constant 0 : index
    %78 = vector.load %arg6[%c0_92, %c39, %c0_93] : memref<1x120x128xf32, #tpu.memory_space<vmem>>, vector<1x32x128xf32>
    %79 = arith.addf %77, %78 : vector<1x32x128xf32>
    %c0_94 = arith.constant 0 : index
    %c40 = arith.constant 40 : index
    %c0_95 = arith.constant 0 : index
    %80 = vector.load %arg6[%c0_94, %c40, %c0_95] : memref<1x120x128xf32, #tpu.memory_space<vmem>>, vector<1x32x128xf32>
    %81 = arith.addf %79, %80 : vector<1x32x128xf32>
    %c0_96 = arith.constant 0 : index
    %c41 = arith.constant 41 : index
    %c0_97 = arith.constant 0 : index
    %82 = vector.load %arg6[%c0_96, %c41, %c0_97] : memref<1x120x128xf32, #tpu.memory_space<vmem>>, vector<1x32x128xf32>
    %83 = arith.addf %81, %82 : vector<1x32x128xf32>
    %c0_98 = arith.constant 0 : index
    %c42 = arith.constant 42 : index
    %c0_99 = arith.constant 0 : index
    %84 = vector.load %arg6[%c0_98, %c42, %c0_99] : memref<1x120x128xf32, #tpu.memory_space<vmem>>, vector<1x32x128xf32>
    %85 = arith.addf %83, %84 : vector<1x32x128xf32>
    %c0_100 = arith.constant 0 : index
    %c43 = arith.constant 43 : index
    %c0_101 = arith.constant 0 : index
    %86 = vector.load %arg6[%c0_100, %c43, %c0_101] : memref<1x120x128xf32, #tpu.memory_space<vmem>>, vector<1x32x128xf32>
    %87 = arith.addf %85, %86 : vector<1x32x128xf32>
    %c0_102 = arith.constant 0 : index
    %c44 = arith.constant 44 : index
    %c0_103 = arith.constant 0 : index
    %88 = vector.load %arg6[%c0_102, %c44, %c0_103] : memref<1x120x128xf32, #tpu.memory_space<vmem>>, vector<1x32x128xf32>
    %89 = arith.addf %87, %88 : vector<1x32x128xf32>
    %c0_104 = arith.constant 0 : index
    %c45 = arith.constant 45 : index
    %c0_105 = arith.constant 0 : index
    %90 = vector.load %arg6[%c0_104, %c45, %c0_105] : memref<1x120x128xf32, #tpu.memory_space<vmem>>, vector<1x32x128xf32>
    %91 = arith.addf %89, %90 : vector<1x32x128xf32>
    %c0_106 = arith.constant 0 : index
    %c46 = arith.constant 46 : index
    %c0_107 = arith.constant 0 : index
    %92 = vector.load %arg6[%c0_106, %c46, %c0_107] : memref<1x120x128xf32, #tpu.memory_space<vmem>>, vector<1x32x128xf32>
    %93 = arith.addf %91, %92 : vector<1x32x128xf32>
    %c0_108 = arith.constant 0 : index
    %c47 = arith.constant 47 : index
    %c0_109 = arith.constant 0 : index
    %94 = vector.load %arg6[%c0_108, %c47, %c0_109] : memref<1x120x128xf32, #tpu.memory_space<vmem>>, vector<1x32x128xf32>
    %95 = arith.addf %93, %94 : vector<1x32x128xf32>
    %c0_110 = arith.constant 0 : index
    %c48 = arith.constant 48 : index
    %c0_111 = arith.constant 0 : index
    %96 = vector.load %arg6[%c0_110, %c48, %c0_111] : memref<1x120x128xf32, #tpu.memory_space<vmem>>, vector<1x32x128xf32>
    %97 = arith.addf %95, %96 : vector<1x32x128xf32>
    %c0_112 = arith.constant 0 : index
    %c49 = arith.constant 49 : index
    %c0_113 = arith.constant 0 : index
    %98 = vector.load %arg6[%c0_112, %c49, %c0_113] : memref<1x120x128xf32, #tpu.memory_space<vmem>>, vector<1x32x128xf32>
    %99 = arith.addf %97, %98 : vector<1x32x128xf32>
    %c0_114 = arith.constant 0 : index
    %c50 = arith.constant 50 : index
    %c0_115 = arith.constant 0 : index
    %100 = vector.load %arg6[%c0_114, %c50, %c0_115] : memref<1x120x128xf32, #tpu.memory_space<vmem>>, vector<1x32x128xf32>
    %101 = arith.addf %99, %100 : vector<1x32x128xf32>
    %c0_116 = arith.constant 0 : index
    %c51 = arith.constant 51 : index
    %c0_117 = arith.constant 0 : index
    %102 = vector.load %arg6[%c0_116, %c51, %c0_117] : memref<1x120x128xf32, #tpu.memory_space<vmem>>, vector<1x32x128xf32>
    %103 = arith.addf %101, %102 : vector<1x32x128xf32>
    %c0_118 = arith.constant 0 : index
    %c52 = arith.constant 52 : index
    %c0_119 = arith.constant 0 : index
    %104 = vector.load %arg6[%c0_118, %c52, %c0_119] : memref<1x120x128xf32, #tpu.memory_space<vmem>>, vector<1x32x128xf32>
    %105 = arith.addf %103, %104 : vector<1x32x128xf32>
    %c0_120 = arith.constant 0 : index
    %c53 = arith.constant 53 : index
    %c0_121 = arith.constant 0 : index
    %106 = vector.load %arg6[%c0_120, %c53, %c0_121] : memref<1x120x128xf32, #tpu.memory_space<vmem>>, vector<1x32x128xf32>
    %107 = arith.addf %105, %106 : vector<1x32x128xf32>
    %c0_122 = arith.constant 0 : index
    %c54 = arith.constant 54 : index
    %c0_123 = arith.constant 0 : index
    %108 = vector.load %arg6[%c0_122, %c54, %c0_123] : memref<1x120x128xf32, #tpu.memory_space<vmem>>, vector<1x32x128xf32>
    %109 = arith.addf %107, %108 : vector<1x32x128xf32>
    %c0_124 = arith.constant 0 : index
    %c55 = arith.constant 55 : index
    %c0_125 = arith.constant 0 : index
    %110 = vector.load %arg6[%c0_124, %c55, %c0_125] : memref<1x120x128xf32, #tpu.memory_space<vmem>>, vector<1x32x128xf32>
    %111 = arith.addf %109, %110 : vector<1x32x128xf32>
    %c0_126 = arith.constant 0 : index
    %c56 = arith.constant 56 : index
    %c0_127 = arith.constant 0 : index
    %112 = vector.load %arg6[%c0_126, %c56, %c0_127] : memref<1x120x128xf32, #tpu.memory_space<vmem>>, vector<1x32x128xf32>
    %113 = arith.addf %111, %112 : vector<1x32x128xf32>
    %cst_128 = arith.constant 4.000000e-02 : f32
    %114 = vector.broadcast %cst_128 : f32 to vector<1x32x128xf32>
    %115 = arith.mulf %113, %114 : vector<1x32x128xf32>
    %c0_129 = arith.constant 0 : index
    %c32_130 = arith.constant 32 : index
    %c0_131 = arith.constant 0 : index
    %116 = vector.load %arg5[%c0_129, %c32_130, %c0_131] : memref<1x96x128xf32, #tpu.memory_space<vmem>>, vector<1x32x128xf32>
    tpu.vector_store %arg5[%c0_129, %c32_130, %c0_131], %115 {strides = array<i32>} : memref<1x96x128xf32, #tpu.memory_space<vmem>>, vector<1x32x128xf32>,
    %c0_132 = arith.constant 0 : index
    %c32_133 = arith.constant 32 : index
    %c0_134 = arith.constant 0 : index
    %117 = vector.load %arg2[%c0_132, %c32_133, %c0_134] : memref<1x96x128xf32, #tpu.memory_space<vmem>>, vector<1x32x128xf32>
    %118 = arith.subf %117, %115 : vector<1x32x128xf32>
    %c0_135 = arith.constant 0 : index
    %c32_136 = arith.constant 32 : index
    %c0_137 = arith.constant 0 : index
    %119 = vector.load %arg4[%c0_135, %c32_136, %c0_137] : memref<1x96x128xf32, #tpu.memory_space<vmem>>, vector<1x32x128xf32>
    tpu.vector_store %arg4[%c0_135, %c32_136, %c0_137], %118 {strides = array<i32>} : memref<1x96x128xf32, #tpu.memory_space<vmem>>, vector<1x32x128xf32>,
    %cst_138 = arith.constant 0.000000e+00 : f32
    %120 = vector.broadcast %cst_138 : f32 to vector<1x32x128xf32>
    %c0_139 = arith.constant 0 : index
    %c64 = arith.constant 64 : index
    %c0_140 = arith.constant 0 : index
    %121 = vector.load %arg6[%c0_139, %c64, %c0_140] : memref<1x120x128xf32, #tpu.memory_space<vmem>>, vector<1x32x128xf32>
    %122 = arith.addf %120, %121 : vector<1x32x128xf32>
    %c0_141 = arith.constant 0 : index
    %c65 = arith.constant 65 : index
    %c0_142 = arith.constant 0 : index
    %123 = vector.load %arg6[%c0_141, %c65, %c0_142] : memref<1x120x128xf32, #tpu.memory_space<vmem>>, vector<1x32x128xf32>
    %124 = arith.addf %122, %123 : vector<1x32x128xf32>
    %c0_143 = arith.constant 0 : index
    %c66 = arith.constant 66 : index
    %c0_144 = arith.constant 0 : index
    %125 = vector.load %arg6[%c0_143, %c66, %c0_144] : memref<1x120x128xf32, #tpu.memory_space<vmem>>, vector<1x32x128xf32>
    %126 = arith.addf %124, %125 : vector<1x32x128xf32>
    %c0_145 = arith.constant 0 : index
    %c67 = arith.constant 67 : index
    %c0_146 = arith.constant 0 : index
    %127 = vector.load %arg6[%c0_145, %c67, %c0_146] : memref<1x120x128xf32, #tpu.memory_space<vmem>>, vector<1x32x128xf32>
    %128 = arith.addf %126, %127 : vector<1x32x128xf32>
    %c0_147 = arith.constant 0 : index
    %c68 = arith.constant 68 : index
    %c0_148 = arith.constant 0 : index
    %129 = vector.load %arg6[%c0_147, %c68, %c0_148] : memref<1x120x128xf32, #tpu.memory_space<vmem>>, vector<1x32x128xf32>
    %130 = arith.addf %128, %129 : vector<1x32x128xf32>
    %c0_149 = arith.constant 0 : index
    %c69 = arith.constant 69 : index
    %c0_150 = arith.constant 0 : index
    %131 = vector.load %arg6[%c0_149, %c69, %c0_150] : memref<1x120x128xf32, #tpu.memory_space<vmem>>, vector<1x32x128xf32>
    %132 = arith.addf %130, %131 : vector<1x32x128xf32>
    %c0_151 = arith.constant 0 : index
    %c70 = arith.constant 70 : index
    %c0_152 = arith.constant 0 : index
    %133 = vector.load %arg6[%c0_151, %c70, %c0_152] : memref<1x120x128xf32, #tpu.memory_space<vmem>>, vector<1x32x128xf32>
    %134 = arith.addf %132, %133 : vector<1x32x128xf32>
    %c0_153 = arith.constant 0 : index
    %c71 = arith.constant 71 : index
    %c0_154 = arith.constant 0 : index
    %135 = vector.load %arg6[%c0_153, %c71, %c0_154] : memref<1x120x128xf32, #tpu.memory_space<vmem>>, vector<1x32x128xf32>
    %136 = arith.addf %134, %135 : vector<1x32x128xf32>
    %c0_155 = arith.constant 0 : index
    %c72 = arith.constant 72 : index
    %c0_156 = arith.constant 0 : index
    %137 = vector.load %arg6[%c0_155, %c72, %c0_156] : memref<1x120x128xf32, #tpu.memory_space<vmem>>, vector<1x32x128xf32>
    %138 = arith.addf %136, %137 : vector<1x32x128xf32>
    %c0_157 = arith.constant 0 : index
    %c73 = arith.constant 73 : index
    %c0_158 = arith.constant 0 : index
    %139 = vector.load %arg6[%c0_157, %c73, %c0_158] : memref<1x120x128xf32, #tpu.memory_space<vmem>>, vector<1x32x128xf32>
    %140 = arith.addf %138, %139 : vector<1x32x128xf32>
    %c0_159 = arith.constant 0 : index
    %c74 = arith.constant 74 : index
    %c0_160 = arith.constant 0 : index
    %141 = vector.load %arg6[%c0_159, %c74, %c0_160] : memref<1x120x128xf32, #tpu.memory_space<vmem>>, vector<1x32x128xf32>
    %142 = arith.addf %140, %141 : vector<1x32x128xf32>
    %c0_161 = arith.constant 0 : index
    %c75 = arith.constant 75 : index
    %c0_162 = arith.constant 0 : index
    %143 = vector.load %arg6[%c0_161, %c75, %c0_162] : memref<1x120x128xf32, #tpu.memory_space<vmem>>, vector<1x32x128xf32>
    %144 = arith.addf %142, %143 : vector<1x32x128xf32>
    %c0_163 = arith.constant 0 : index
    %c76 = arith.constant 76 : index
    %c0_164 = arith.constant 0 : index
    %145 = vector.load %arg6[%c0_163, %c76, %c0_164] : memref<1x120x128xf32, #tpu.memory_space<vmem>>, vector<1x32x128xf32>
    %146 = arith.addf %144, %145 : vector<1x32x128xf32>
    %c0_165 = arith.constant 0 : index
    %c77 = arith.constant 77 : index
    %c0_166 = arith.constant 0 : index
    %147 = vector.load %arg6[%c0_165, %c77, %c0_166] : memref<1x120x128xf32, #tpu.memory_space<vmem>>, vector<1x32x128xf32>
    %148 = arith.addf %146, %147 : vector<1x32x128xf32>
    %c0_167 = arith.constant 0 : index
    %c78 = arith.constant 78 : index
    %c0_168 = arith.constant 0 : index
    %149 = vector.load %arg6[%c0_167, %c78, %c0_168] : memref<1x120x128xf32, #tpu.memory_space<vmem>>, vector<1x32x128xf32>
    %150 = arith.addf %148, %149 : vector<1x32x128xf32>
    %c0_169 = arith.constant 0 : index
    %c79 = arith.constant 79 : index
    %c0_170 = arith.constant 0 : index
    %151 = vector.load %arg6[%c0_169, %c79, %c0_170] : memref<1x120x128xf32, #tpu.memory_space<vmem>>, vector<1x32x128xf32>
    %152 = arith.addf %150, %151 : vector<1x32x128xf32>
    %c0_171 = arith.constant 0 : index
    %c80 = arith.constant 80 : index
    %c0_172 = arith.constant 0 : index
    %153 = vector.load %arg6[%c0_171, %c80, %c0_172] : memref<1x120x128xf32, #tpu.memory_space<vmem>>, vector<1x32x128xf32>
    %154 = arith.addf %152, %153 : vector<1x32x128xf32>
    %c0_173 = arith.constant 0 : index
    %c81 = arith.constant 81 : index
    %c0_174 = arith.constant 0 : index
    %155 = vector.load %arg6[%c0_173, %c81, %c0_174] : memref<1x120x128xf32, #tpu.memory_space<vmem>>, vector<1x32x128xf32>
    %156 = arith.addf %154, %155 : vector<1x32x128xf32>
    %c0_175 = arith.constant 0 : index
    %c82 = arith.constant 82 : index
    %c0_176 = arith.constant 0 : index
    %157 = vector.load %arg6[%c0_175, %c82, %c0_176] : memref<1x120x128xf32, #tpu.memory_space<vmem>>, vector<1x32x128xf32>
    %158 = arith.addf %156, %157 : vector<1x32x128xf32>
    %c0_177 = arith.constant 0 : index
    %c83 = arith.constant 83 : index
    %c0_178 = arith.constant 0 : index
    %159 = vector.load %arg6[%c0_177, %c83, %c0_178] : memref<1x120x128xf32, #tpu.memory_space<vmem>>, vector<1x32x128xf32>
    %160 = arith.addf %158, %159 : vector<1x32x128xf32>
    %c0_179 = arith.constant 0 : index
    %c84 = arith.constant 84 : index
    %c0_180 = arith.constant 0 : index
    %161 = vector.load %arg6[%c0_179, %c84, %c0_180] : memref<1x120x128xf32, #tpu.memory_space<vmem>>, vector<1x32x128xf32>
    %162 = arith.addf %160, %161 : vector<1x32x128xf32>
    %c0_181 = arith.constant 0 : index
    %c85 = arith.constant 85 : index
    %c0_182 = arith.constant 0 : index
    %163 = vector.load %arg6[%c0_181, %c85, %c0_182] : memref<1x120x128xf32, #tpu.memory_space<vmem>>, vector<1x32x128xf32>
    %164 = arith.addf %162, %163 : vector<1x32x128xf32>
    %c0_183 = arith.constant 0 : index
    %c86 = arith.constant 86 : index
    %c0_184 = arith.constant 0 : index
    %165 = vector.load %arg6[%c0_183, %c86, %c0_184] : memref<1x120x128xf32, #tpu.memory_space<vmem>>, vector<1x32x128xf32>
    %166 = arith.addf %164, %165 : vector<1x32x128xf32>
    %c0_185 = arith.constant 0 : index
    %c87 = arith.constant 87 : index
    %c0_186 = arith.constant 0 : index
    %167 = vector.load %arg6[%c0_185, %c87, %c0_186] : memref<1x120x128xf32, #tpu.memory_space<vmem>>, vector<1x32x128xf32>
    %168 = arith.addf %166, %167 : vector<1x32x128xf32>
    %c0_187 = arith.constant 0 : index
    %c88 = arith.constant 88 : index
    %c0_188 = arith.constant 0 : index
    %169 = vector.load %arg6[%c0_187, %c88, %c0_188] : memref<1x120x128xf32, #tpu.memory_space<vmem>>, vector<1x32x128xf32>
    %170 = arith.addf %168, %169 : vector<1x32x128xf32>
    %cst_189 = arith.constant 4.000000e-02 : f32
    %171 = vector.broadcast %cst_189 : f32 to vector<1x32x128xf32>
    %172 = arith.mulf %170, %171 : vector<1x32x128xf32>
    %c0_190 = arith.constant 0 : index
    %c64_191 = arith.constant 64 : index
    %c0_192 = arith.constant 0 : index
    %173 = vector.load %arg5[%c0_190, %c64_191, %c0_192] : memref<1x96x128xf32, #tpu.memory_space<vmem>>, vector<1x32x128xf32>
    tpu.vector_store %arg5[%c0_190, %c64_191, %c0_192], %172 {strides = array<i32>} : memref<1x96x128xf32, #tpu.memory_space<vmem>>, vector<1x32x128xf32>,
    %c0_193 = arith.constant 0 : index
    %c64_194 = arith.constant 64 : index
    %c0_195 = arith.constant 0 : index
    %174 = vector.load %arg2[%c0_193, %c64_194, %c0_195] : memref<1x96x128xf32, #tpu.memory_space<vmem>>, vector<1x32x128xf32>
    %175 = arith.subf %174, %172 : vector<1x32x128xf32>
    %c0_196 = arith.constant 0 : index
    %c64_197 = arith.constant 64 : index
    %c0_198 = arith.constant 0 : index
    %176 = vector.load %arg4[%c0_196, %c64_197, %c0_198] : memref<1x96x128xf32, #tpu.memory_space<vmem>>, vector<1x32x128xf32>
    tpu.vector_store %arg4[%c0_196, %c64_197, %c0_198], %175 {strides = array<i32>} : memref<1x96x128xf32, #tpu.memory_space<vmem>>, vector<1x32x128xf32>,
    return
  }
  func.func @transform_0(%arg0: i32, %arg1: i32) -> (i32, i32, i32) {
    %c0_i32 = arith.constant 0 : i32
    %c0_i32_0 = arith.constant 0 : i32
    return %arg0, %arg1, %c0_i32 : i32, i32, i32
  }
  func.func @transform_1(%arg0: i32, %arg1: i32) -> (i32, i32, i32) {
    %c1_i32 = arith.constant 1 : i32
    %0 = arith.muli %arg0, %c1_i32 : i32
    %1 = arith.addi %0, %arg1 : i32
    %c0_i32 = arith.constant 0 : i32
    %c0_i32_0 = arith.constant 0 : i32
    %c0_i32_1 = arith.constant 0 : i32
    return %1, %c0_i32, %c0_i32_0 : i32, i32, i32
  }
  func.func @transform_2(%arg0: i32, %arg1: i32) -> (i32, i32, i32) {
    %c0_i32 = arith.constant 0 : i32
    %c0_i32_0 = arith.constant 0 : i32
    return %arg0, %arg1, %c0_i32 : i32, i32, i32
  }
  func.func @transform_3(%arg0: i32, %arg1: i32) -> (i32, i32, i32) {
    %c0_i32 = arith.constant 0 : i32
    %c0_i32_0 = arith.constant 0 : i32
    return %arg0, %arg1, %c0_i32 : i32, i32, i32
  }
}

</mosaic_0001>

<bundles_post_ra>
// kernel: tpu_custom_call.1
= control target key start
LH: loop header
LB: loop body
LE: loop exit
PB: predicated region body
PF: predicated region fallthrough
CT: control target
= control target key end

     0   :  { %9 = vsyncpa [#allocation4], 0  ;;  %s2064_s0 = inlined_call_operand.hbm [shape: f32[2,96,128], index: 0, kind: input, shape index: {}]   ;;  %s2065_s1 = inlined_call_operand.hbm [shape: f32[2,24,128], index: 1, kind: input, shape index: {}]   ;;  %s2066_s2 = inlined_call_operand.hbm [shape: f32[2,96,128], index: 2, kind: output, shape index: {0}]   ;;  %s2067_s3 = inlined_call_operand.hbm [shape: f32[2,96,128], index: 3, kind: output, shape index: {1}]  }
   0x1   :  { %11 = vsyncpa [#allocation4 + $0x1], 0 }
   0x2   :  { %12 = vsyncpa [#allocation7], 0 }
   0x3   :  { %14 = vsyncpa [#allocation7 + $0x1], 0 }
   0x4   :  { %15 = vsyncpa [#allocation5], 0 }
   0x5   :  { %17 = vsyncpa [#allocation5 + $0x1], 0 }
   0x6   :  { %18 = vsyncpa [#allocation10], 0 }
   0x7   :  { %20 = vsyncpa [#allocation10 + $0x1], 0  ;;  %s1297_s12 = smov 0   ;;  %s1299_s13 = smov 0  }
   0x8   :  { %s1301_s14 = smov 0   ;;  %s1303_s15 = smov 0  }
   0x9   :  { %s1305_s16 = smov 0   ;;  %s1307_s17 = smov 0  }
   0xa LB: > { %s994_s18 = sadd.s32 4294967295, %s1267_s17   ;;  %s995_s19 = sadd.s32 4294967294, %s1267_s17   ;;  %s1267_s17 = sphi %s1307_s17, %s26_s17   ;;  %s1263_s16 = sphi %s1305_s16, %s2170_s16   ;;  %s1259_s15 = sphi %s1303_s15, %s2169_s15   ;;  %s1255_s14 = sphi %s1301_s14, %s2168_s14   ;;  %s1251_s13 = sphi %s1299_s13, %s2167_s13   ;;  %s1247_s12 = sphi %s1297_s12, %s2166_s12  }
   0xb   : > { %s38_s20 = sadd.s32 1, %s1263_s16  ;;  %s47_s21 = sadd.s32 1, %s1255_s14 }
   0xc   : > { %p40_p0 = scmp.ge.s32.totalorder %s38_s20, 2  ;;  %p54_p1 = scmp.ne.s32.totalorder %s1255_s14, %s1251_s13 }
   0xd   : > { %p55_p2 = scmp.eq.s32.totalorder %s1267_s17, 0  ;;  %p60_p3 = scmp.ne.s32.totalorder %s1251_s13, %s1247_s12 }
   0xe   : > { %s2172_s20 = smov (%p40_p0, %s38_s20), 0  ;;  %p61_p5 = scmp.eq.s32.totalorder %s994_s18, 0 }
   0xf   : > { %p1338_p4 = por %p55_p2, %p54_p1  ;;  %s42_s23 = ssub.s32 %s1263_s16, %s2172_s20 }
  0x10   : > { %p114_p6 = scmp.eq.s32.totalorder %s994_s18, 1  ;;  %p45_p7 = scmp.eq.s32.totalorder %s42_s23, 0 }
  0x11   : > { %p1344_p8 = por %p61_p5, %p60_p3  ;;  %p120_p10 = scmp.eq.s32.totalorder %s995_s19, 1 }
  0x12   : > { %p1348_p9 = por %p114_p6, %p54_p1  ;;  %p1035_p13 = scmp.lt.s32.totalorder %s1267_s17, 2 }
  0x13   : > { %s2108_s24 = scalar_select %p1344_p8, 1, 0 }
  0x14   : > { %s2109_s25 = scalar_select %p1348_p9, 1, 0 }
  0x15   : > { %s1353_s26 = scalar_select %p45_p7, %s1255_s14, %s47_s21  }
  0x16   : > { %p1355_p11 = por %p120_p10, %p60_p3  ;;  %s1362_s28 = sand.u32 1, %s1255_s14  }
  0x17   : > { %s1005_s29 = smul.u32 96, %s1362_s28  ;;  %p1368_p0 = pnand %p1035_p13, %p1338_p4 }
  0x18   : > { %s2110_s27 = scalar_select %p1355_p11, 1, 0 }
  0x19   : > { %s1006_s30 = smul.u32 1536, %s1263_s16  ;;  %s172_s8 = scalar_lea.vmem [#allocation3], %s1005_s29 }
  0x1a   : > { %s181_s9 = sshll.u32 %s172_s8, 4  ;;  %s169_s10 = scalar_lea.sflag [#allocation4], %s1362_s28  ;;  %s1377_s9 = int_to_ptr.vmem [resolvable:$true] %s181_s9 }
  0x1b   : > { %s1375_s7 = scalar_lea.hbm %s2064_s0, %s1006_s30  ;;  %p1091_p3 = pneg %p1368_p0 }
  0x1c   : > { %s1089_s11 = scalar_lea.hbm %s1375_s7, 1536  ;;  %s1094_s21 = scalar_lea.hbm %s2064_s0, 3072 }
  0x1d   : > { %p1090_p2 = scmp.ne.s32.totalorder %s1375_s7, %s1089_s11  ;;  %p1095_p6 = scmp.lt.u32.totalorder %s1375_s7, %s2064_s0 }
  0x1e   : > { %p1096_p7 = scmp.lt.u32.totalorder %s1094_s21, %s1089_s11  ;;  %p1098_p13 = scmp.lt.u32.totalorder %s1089_s11, %s1375_s7 }
  0x1f   : > { %p1092_p4 = pnand %p1091_p3, %p1090_p2 }
  0x20   : > { %p1097_p10 = por %p1096_p7, %p1095_p6 }
  0x21   : > { %p1093_p5 = pneg %p1092_p4 }
  0x22   : > { %p1099_p12 = por %p1098_p13, %p1097_p10 }
  0x24   : > { %p1100_p1 = pnand %p1099_p12, %p1093_p5 }
  0x26   : > { %1103 = shalt.err (!%p1100_p1)
}
  0x27   : > { %s1104_s29 = scalar_lea.vmem %s1377_s9, 1536  ;;  %s1269_s30 = smov [#allocation3]  }
  0x28   : > { %p1105_p2 = scmp.ne.s32.totalorder %s1377_s9, %s1104_s29  ;;  %s1109_s5 = sshll.u32 %s1269_s30, 4  ;;  %s1110_s5 = int_to_ptr.vmem [resolvable:$false] %s1109_s5 }
  0x29   : > { %s1111_s6 = scalar_lea.vmem %s1110_s5, 3072  ;;  %p1112_p9 = scmp.lt.s32.totalorder %s1377_s9, %s1110_s5 }
  0x2a   : > { %p1107_p4 = pnand %p1105_p2, %p1091_p3  ;;  %p1113_p6 = scmp.lt.s32.totalorder %s1111_s6, %s1104_s29 }
  0x2c   : > { %p1108_p11 = pneg %p1107_p4  ;;  %p1114_p7 = por %p1113_p6, %p1112_p9 }
  0x2e   : > { %p1115_p10 = pnand %p1114_p7, %p1108_p11 }
  0x30   : > { %1118 = shalt.err (!%p1115_p10)
}
  0x31   : > { %s1270_s8 = smov 128   ;;  %s1271_s11 = smov 8  }
  0x32   : > { %1024 = dma.hbm_to_vmem [thread:$0]  (!%p1368_p0), %s1375_s7, 1536, %s1377_s9, %s169_s10, %s1270_s8, %s1270_s8, %s1271_s11  }
  0x33   : > { %p211_p9 = scmp.lt.s32.totalorder %s1267_s17, 3  ;;  %s1007_s18 = smul.u32 24, %s1362_s28 }
  0x34   : > { %p2112_p11 = scmp.ge.s32.totalorder %s1267_s17, 1  ;;  %s1008_s21 = smul.u32 384, %s1263_s16 }
  0x35   : > { %s195_s30 = scalar_lea.vmem [#allocation6], %s1007_s18  ;;  %s192_s7 = scalar_lea.sflag [#allocation7], %s1362_s28 }
  0x36   : > { %p1415_p12 = pnand %p2112_p11, %p211_p9  ;;  %s1423_s29 = scalar_lea.hbm %s2065_s1, %s1008_s21 }
  0x37   : > { %s203_s5 = sshll.u32 %s195_s30, 4  ;;  %s1119_s9 = scalar_lea.hbm %s1423_s29, 384  ;;  %s1425_s5 = int_to_ptr.vmem [resolvable:$true] %s203_s5 }
  0x38   : > { %p1120_p1 = scmp.ne.s32.totalorder %s1423_s29, %s1119_s9  ;;  %s1124_s21 = scalar_lea.hbm %s2065_s1, 768 }
  0x39   : > { %p1125_p2 = scmp.lt.u32.totalorder %s1423_s29, %s2065_s1  ;;  %p1126_p4 = scmp.lt.u32.totalorder %s1124_s21, %s1119_s9 }
  0x3a   : > { %p1122_p5 = pnand %p1120_p1, %p1091_p3  ;;  %p1128_p7 = scmp.lt.u32.totalorder %s1119_s9, %s1423_s29 }
  0x3b   : > { %p1127_p6 = por %p1126_p4, %p1125_p2 }
  0x3c   : > { %p1123_p13 = pneg %p1122_p5 }
  0x3d   : > { %p1129_p10 = por %p1128_p7, %p1127_p6 }
  0x3f   : > { %p1130_p9 = pnand %p1129_p10, %p1123_p13 }
  0x41   : > { %1133 = shalt.err (!%p1130_p9)
}
  0x42   : > { %s1134_s18 = scalar_lea.vmem %s1425_s5, 384  ;;  %s1272_s30 = smov [#allocation6]  }
  0x43   : > { %p1135_p11 = scmp.ne.s32.totalorder %s1425_s5, %s1134_s18  ;;  %s1139_s10 = sshll.u32 %s1272_s30, 4  ;;  %s1140_s10 = int_to_ptr.vmem [resolvable:$false] %s1139_s10 }
  0x44   : > { %s1141_s6 = scalar_lea.vmem %s1140_s10, 768  ;;  %p1142_p8 = scmp.lt.s32.totalorder %s1425_s5, %s1140_s10 }
  0x45   : > { %p1137_p1 = pnand %p1135_p11, %p1091_p3  ;;  %p1143_p2 = scmp.lt.s32.totalorder %s1141_s6, %s1134_s18 }
  0x47   : > { %p1138_p5 = pneg %p1137_p1  ;;  %p1144_p4 = por %p1143_p2, %p1142_p8 }
  0x49   : > { %p1145_p6 = pnand %p1144_p4, %p1138_p5 }
  0x4b   : > { %1148 = shalt.err (!%p1145_p6)
}
  0x4c   : > { %1027 = dma.hbm_to_vmem [thread:$0]  (!%p1368_p0), %s1423_s29, 384, %s1425_s5, %s192_s7, %s1270_s8, %s1270_s8, %s1271_s11  }
  0x4d   : > { %215 = sbr.rel (%p1415_p12) target bundleno = 254 (0xfe), region = 28 }
  0x54   : > { %s1459_s9 = sand.u32 1, %s1251_s13   ;;  %p2114_p8 = scmp.ne.s32.totalorder %s2108_s24, 0 }
  0x55   : > { %s1462_s21 = smul.u32 96, %s1459_s9  ;;  %s218_s4 = scalar_lea.sflag [#allocation4], %s1459_s9 }
  0x57   : > { %s221_s22 = scalar_lea.vmem [#allocation3], %s1462_s21 }
  0x58   : > { %1230 = dma.done.wait (%p2114_p8), %s218_s4, 1536  }
  0x59   : > { %1232 = vsyncadd (%p2114_p8), %s218_s4, 4294965760  ;;  %s1010_s28 = smul.u32 24, %s1459_s9  ;;  %s227_s8 = scalar_lea.sflag [#allocation7], %s1459_s9 }
  0x5b   : > { %s1472_s11 = scalar_lea.vmem [#allocation6], %s1010_s28 }
  0x5c   : > { %1234 = dma.done.wait (%p2114_p8), %s227_s8, 384  }
  0x5d   : > { %1236 = vsyncadd (%p2114_p8), %s227_s8, 4294966912  ;;  %v1478_v0 = vld [vmem:[%s221_s22] sm:$0xff]  ;;  %v1480_v1 = vld [vmem:[%s221_s22 + $0x8] sm:$0xff]  ;;  %s1841_s24 = scalar_lea.vmem [#allocation9], %s1462_s21  ;;  %s1891_s19 = scalar_lea.vmem [#allocation8], %s1462_s21 }
  0x5e   : > { %2115 = vst [vmem:[#allocation15_spill] sm:$0xff] %v1478_v0  ;;  %v1482_v2 = vld [vmem:[%s221_s22 + $0x10] sm:$0xff]  ;;  %279 = vst [vmem:[#allocation2 + $0xc] sm:$0xff] %v1478_v0  ;;  %v1487_v3 = vld [vmem:[%s221_s22 + $0x18] sm:$0xff]  ;;  %s1011_s29 = smul.u32 1536, %s1259_s15  ;;  %s848_s5 = sshll.u32 %s1841_s24, 4  ;;  %s1971_s5 = int_to_ptr.vmem [resolvable:$true] %s848_s5 }
  0x5f   : > { %280 = vst [vmem:[#allocation2 + $0x14] sm:$0xff] %v1480_v1  ;;  %281 = vst [vmem:[#allocation2 + $0x1c] sm:$0xff] %v1482_v2  ;;  %v1489_v4 = vld [vmem:[%s221_s22 + $0x20] sm:$0xff]  ;;  %v1491_v5 = vld [vmem:[%s221_s22 + $0x28] sm:$0xff]  ;;  %s830_s7 = sshll.u32 %s1891_s19, 4  ;;  %s815_s21 = scalar_lea.sflag [#allocation10], %s1459_s9  ;;  %s1983_s7 = int_to_ptr.vmem [resolvable:$true] %s830_s7 }
  0x60   : > { %2116 = vst [vmem:[#allocation16_spill] sm:$0xff] %v1489_v4  ;;  %282 = vst [vmem:[#allocation2 + $0x24] sm:$0xff] %v1487_v3  ;;  %v1496_v6 = vld [vmem:[%s221_s22 + $0x30] sm:$0xff]  ;;  %v1498_v7 = vld [vmem:[%s221_s22 + $0x38] sm:$0xff]  ;;  %s1969_s30 = scalar_lea.hbm %s2067_s3, %s1011_s29  ;;  %s1981_s6 = scalar_lea.hbm %s2066_s2, %s1011_s29 }
  0x61   : > { %283 = vst [vmem:[#allocation2 + $0x2c] sm:$0xff] %v1489_v4  ;;  %284 = vst [vmem:[#allocation2 + $0x34] sm:$0xff] %v1491_v5  ;;  %v1500_v8 = vld [vmem:[%s221_s22 + $0x40] sm:$0xff]  ;;  %v1505_v9 = vld [vmem:[%s221_s22 + $0x48] sm:$0xff]  ;;  %s1149_s4 = scalar_lea.vmem %s1971_s5, 1536  ;;  %p2163_p3 = scmp.ne.s32.totalorder %s2109_s25, 0 }
  0x62   : > { %2117 = vst [vmem:[#allocation17_spill] sm:$0xff] %v1498_v7  ;;  %2118 = vst [vmem:[#allocation18_spill] sm:$0xff] %v1500_v8  ;;  %v1507_v10 = vld [vmem:[%s221_s22 + $0x50] sm:$0xff]  ;;  %v1509_v11 = vld [vmem:[%s221_s22 + $0x58] sm:$0xff]  ;;  %p1150_p0 = scmp.ne.s32.totalorder %s1971_s5, %s1149_s4  ;;  %s1273_s22 = smov [#allocation9]  }
  0x63   : > { %285 = vst [vmem:[#allocation2 + $0x3c] sm:$0xff] %v1496_v6  ;;  %286 = vst [vmem:[#allocation2 + $0x44] sm:$0xff] %v1498_v7  ;;  %v291_v12 = vld [vmem:[%s1472_s11] sm:$0xff]  ;;  %v292_v13 = vld [vmem:[%s1472_s11 + $0x8] sm:$0xf]  ;;  %s1153_s28 = sshll.u32 %s1273_s22, 4  ;;  %s1154_s28 = int_to_ptr.vmem [resolvable:$false] %s1153_s28 }
  0x64   : > { %287 = vst [vmem:[#allocation2 + $0x4c] sm:$0xff] %v1500_v8  ;;  %2119 = vst [vmem:[#allocation19_spill] sm:$0xff] %v1505_v9  ;;  %v1517_v14 = vld [vmem:[%s1472_s11 + $0xc] sm:$0xff]  ;;  %v296_v15 = vld [vmem:[%s1472_s11 + $0x14] sm:$0xf]  ;;  %p1151_p12 = pnand %p1150_p0, %p2163_p3  ;;  %s1155_s8 = scalar_lea.vmem %s1154_s28, 3072 }
  0x65   : > { %2120 = vst [vmem:[#allocation20_spill] sm:$0xff] %v1507_v10  ;;  %2121 = vst [vmem:[#allocation21_spill] sm:$0xff] %v1509_v11  ;;  %p1156_p7 = scmp.lt.s32.totalorder %s1971_s5, %s1154_s28  ;;  %p1157_p10 = scmp.lt.s32.totalorder %s1155_s8, %s1149_s4 }
  0x66   : > { %288 = vst [vmem:[#allocation2 + $0x54] sm:$0xff] %v1505_v9  ;;  %289 = vst [vmem:[#allocation2 + $0x5c] sm:$0xff] %v1507_v10  ;;  %v1538_v25 = vld [vmem:[#allocation2 + $0x10] sm:$0xff]  ;;  %v1568_v44 = vld [vmem:[#allocation2 + $0x18] sm:$0xff]  ;;  %p1152_p13 = pneg %p1151_p12 }
  0x67   : > { %290 = vst [vmem:[#allocation2 + $0x64] sm:$0xff] %v1509_v11  ;;  %2122 = vst [vmem:[#allocation22_spill] sm:$0xff] %v1517_v14  ;;  %v1521_v16 = vld [vmem:[#allocation2 + $0x20] sm:$0xff]  ;;  %v1540_v26 = vld [vmem:[#allocation2 + $0x11] sm:$0xff]  ;;  %p1158_p9 = por %p1157_p10, %p1156_p7 }
  0x68   : > { %293 = vst [vmem:[#allocation2] sm:$0xff] %v291_v12  ;;  %294 = vst [vmem:[#allocation2 + $0x8] sm:$0xf] %v292_v13  ;;  %v1523_v17 = vld [vmem:[#allocation2 + $0x21] sm:$0xff]  ;;  %v1545_v29 = vld [vmem:[#allocation2 + $0x29] sm:$0xff]  ;;  %v313_v37 = vadd.f32 %v1540_v26, %v1538_v25 }
  0x69   : > { %297 = vst [vmem:[#allocation2 + $0x6c] sm:$0xff] %v1517_v14  ;;  %298 = vst [vmem:[#allocation2 + $0x74] sm:$0xf] %v296_v15  ;;  %v480_v18 = vadd.f32 %v1523_v17, %v1521_v16  ;;  %v1527_v19 = vld [vmem:[#allocation2 + $0x22] sm:$0xff]  ;;  %v1570_v45 = vld [vmem:[#allocation2 + $0x2a] sm:$0xff]  ;;  %p1159_p11 = pnand %p1158_p9, %p1152_p13 }
  0x6a   : > { %v1530_v21 = vld [vmem:[#allocation2 + $0x40] sm:$0xff]  ;;  %2123 = vst [vmem:[#allocation23_spill] sm:$0xff] %v1538_v25  ;;  %v1543_v28 = vld [vmem:[#allocation2 + $0x28] sm:$0xff]  ;;  %2125 = vst [vmem:[#allocation25_spill] sm:$0xff] %v1545_v29 }
  0x6b   : > { %v488_v20 = vadd.f32 %v1527_v19, %v480_v18  ;;  %v1532_v22 = vld [vmem:[#allocation2 + $0x41] sm:$0xff]  ;;  %2124 = vst [vmem:[#allocation24_spill] sm:$0xff] %v1543_v28  ;;  %v481_v38 = vadd.f32 %v1545_v29, %v1543_v28  ;;  %2128 = vst [vmem:[#allocation28_spill] sm:$0xff] %v1570_v45  ;;  %v1578_v51 = vld [vmem:[#allocation2 + $0x49] sm:$0xff] }
  0x6c   : > { %v1534_v23 = vld [vmem:[#allocation2 + $0x23] sm:$0xff]  ;;  %v649_v24 = vadd.f32 %v1532_v22, %v1530_v21  ;;  %2130 = vst [vmem:[#allocation30_spill] sm:$0xff] %v1578_v51  ;;  %v1581_v54 = vld [vmem:[#allocation2 + $0x19] sm:$0xff]  ;;  %v1628_v11 = vld [vmem:[#allocation2 + $0x30] sm:$0xff] }
  0x6d   : > { %v496_v27 = vadd.f32 %v1534_v23, %v488_v20  ;;  %v1547_v30 = vld [vmem:[#allocation2 + $0x42] sm:$0xff]  ;;  %v1583_v55 = vld [vmem:[#allocation2 + $0x12] sm:$0xff]  ;;  %v314_v59 = vadd.f32 %v1581_v54, %v1568_v44  ;;  %v489_v62 = vadd.f32 %v1570_v45, %v481_v38  ;;  %v1597_v15 = vld [vmem:[#allocation2 + $0x1a] sm:$0xff] }
  0x6e   : > { %2126 = vst [vmem:[#allocation26_spill] sm:$0xff] %v1547_v30  ;;  %v657_v31 = vadd.f32 %v1547_v30, %v649_v24  ;;  %v1553_v34 = vld [vmem:[#allocation2 + $0x43] sm:$0xff]  ;;  %v321_v60 = vadd.f32 %v1583_v55, %v313_v37  ;;  %v1599_v18 = vld [vmem:[#allocation2 + $0x13] sm:$0xff] }
  0x6f   : > { %v1550_v32 = vld [vmem:[#allocation2 + $0x8] sm:$0xff]  ;;  %v504_v33 = vadd.f32 %v496_v27, %v1487_v3  ;;  %2127 = vst [vmem:[#allocation27_spill] sm:$0xff] %v1553_v34 }
  0x70   : > { %v307_v35 = vld [vmem:[#allocation2 + $0x1] sm:$0xff]  ;;  %v1555_v36 = vld [vmem:[#allocation2 + $0x9] sm:$0xff]  ;;  %v665_v41 = vadd.f32 %v1553_v34, %v657_v31  ;;  %v329_v37 = vadd.f32 %v1599_v18, %v321_v60 }
  0x71   : > { %v1561_v39 = vld [vmem:[#allocation2 + $0x25] sm:$0xff]  ;;  %v311_v42 = vadd.f32 %v307_v35, %v291_v12  ;;  %v312_v43 = vadd.f32 %v1555_v36, %v1550_v32  ;;  %v322_v35 = vadd.f32 %v1597_v15, %v314_v59  ;;  %v1620_v59 = vld [vmem:[#allocation2 + $0xd] sm:$0xff] }
  0x72   : > { %v1563_v40 = vld [vmem:[#allocation2 + $0x26] sm:$0xff]  ;;  %v512_v46 = vadd.f32 %v1561_v39, %v504_v33  ;;  %v673_v50 = vadd.f32 %v665_v41, %v1498_v7  ;;  %v1638_v9 = vld [vmem:[#allocation2 + $0xe] sm:$0xff]  ;;  %v1672_v7 = vld [vmem:[#allocation2 + $0x3a] sm:$0xff] }
  0x73   : > { %v1573_v47 = vld [vmem:[#allocation2 + $0x48] sm:$0xff] }
  0x74   : > { %2129 = vst [vmem:[#allocation29_spill] sm:$0xff] %v1573_v47  ;;  %v315_v48 = vld [vmem:[#allocation2 + $0x2] sm:$0xff]  ;;  %v1575_v49 = vld [vmem:[#allocation2 + $0xa] sm:$0xff]  ;;  %v520_v56 = vadd.f32 %v1563_v40, %v512_v46  ;;  %v650_v27 = vadd.f32 %v1578_v51, %v1573_v47 }
  0x75   : > { %v319_v52 = vadd.f32 %v315_v48, %v311_v42  ;;  %v320_v53 = vadd.f32 %v1575_v49, %v312_v43  ;;  %v1586_v57 = vld [vmem:[#allocation2 + $0x45] sm:$0xff]  ;;  %v1614_v48 = vld [vmem:[#allocation2 + $0x1b] sm:$0xff] }
  0x76   : > { %2131 = vst [vmem:[#allocation31_spill] sm:$0xff] %v1586_v57  ;;  %v323_v58 = vld [vmem:[#allocation2 + $0x3] sm:$0xff]  ;;  %v1591_v61 = vld [vmem:[#allocation2 + $0xb] sm:$0xff]  ;;  %v681_v12 = vadd.f32 %v1586_v57, %v673_v50 }
  0x77   : > { %v1594_v63 = vld [vmem:[#allocation2 + $0x27] sm:$0xff]  ;;  %v327_v13 = vadd.f32 %v323_v58, %v319_v52  ;;  %v328_v20 = vadd.f32 %v1591_v61, %v320_v53  ;;  %v337_v58 = vadd.f32 %v329_v37, %v1480_v1 }
  0x78   : > { %2132 = vst [vmem:[#allocation32_spill] sm:$0xff] %v1594_v63  ;;  %v528_v24 = vadd.f32 %v1594_v63, %v520_v56  ;;  %v1605_v31 = vld [vmem:[#allocation2 + $0x46] sm:$0xff]  ;;  %v330_v56 = vadd.f32 %v1614_v48, %v322_v35  ;;  %v1678_v63 = vld [vmem:[#allocation2 + $0x33] sm:$0xff] }
  0x79   : > { %2133 = vst [vmem:[#allocation33_spill] sm:$0xff] %v1605_v31  ;;  %v331_v33 = vld [vmem:[#allocation2 + $0x4] sm:$0xff]  ;;  %v689_v41 = vadd.f32 %v1605_v31, %v681_v12  ;;  %v336_v50 = vadd.f32 %v328_v20, %v1478_v0  ;;  %v1630_v20 = vld [vmem:[#allocation2 + $0x38] sm:$0xff] }
  0x7a   : > { %v1609_v38 = vld [vmem:[#allocation2 + $0x4a] sm:$0xff]  ;;  %v335_v43 = vadd.f32 %v331_v33, %v327_v13  ;;  %v533_v52 = vadd.f32 %v528_v24, %v1543_v28  ;;  %v1625_v13 = vld [vmem:[#allocation2 + $0x15] sm:$0xff] }
  0x7b   : > { %2134 = vst [vmem:[#allocation34_spill] sm:$0xff] %v1609_v38  ;;  %v1612_v42 = vld [vmem:[#allocation2 + $0x47] sm:$0xff]  ;;  %v344_v33 = vadd.f32 %v1620_v59, %v336_v50  ;;  %v1635_v37 = vadd.f32 %v1609_v38, %v650_v27  ;;  %v345_v10 = vadd.f32 %v1625_v13, %v337_v58  ;;  %v1649_v27 = vld [vmem:[#allocation2 + $0x1d] sm:$0xff] }
  0x7c   : > { %2135 = vst [vmem:[#allocation35_spill] sm:$0xff] %v1612_v42  ;;  %v339_v46 = vld [vmem:[#allocation2 + $0x5] sm:$0xff]  ;;  %v697_v12 = vadd.f32 %v1612_v42, %v689_v41  ;;  %v538_v35 = vadd.f32 %v533_v52, %v1545_v29  ;;  %v338_v41 = vadd.f32 %v330_v56, %v1482_v2  ;;  %v1654_v56 = vld [vmem:[#allocation2 + $0xf] sm:$0xff]  ;;  %v1656_v38 = vld [vmem:[#allocation2 + $0x17] sm:$0xff] }
  0x7d   : > { %v347_v53 = vld [vmem:[#allocation2 + $0x6] sm:$0xff]  ;;  %v343_v14 = vadd.f32 %v339_v46, %v335_v43  ;;  %2136 = vst [vmem:[#allocation36_spill] sm:$0xff] %v1635_v37  ;;  %v1641_v43 = vld [vmem:[#allocation2 + $0x31] sm:$0xff]  ;;  %v1643_v46 = vld [vmem:[#allocation2 + $0x39] sm:$0xff]  ;;  %v352_v52 = vadd.f32 %v1638_v9, %v344_v33 }
  0x7e   : > { %v1622_v60 = vld [vmem:[#allocation2 + $0x2b] sm:$0xff]  ;;  %v702_v50 = vadd.f32 %v697_v12, %v1573_v47  ;;  %v482_v58 = vadd.f32 %v1641_v43, %v1628_v11  ;;  %v346_v31 = vadd.f32 %v1649_v27, %v338_v41 }
  0x7f   : > { %v497_v24 = vadd.f32 %v489_v62, %v1622_v60  ;;  %v351_v8 = vadd.f32 %v347_v53, %v343_v14  ;;  %v355_v42 = vld [vmem:[#allocation2 + $0x7] sm:$0xff]  ;;  %v1646_v62 = vld [vmem:[#allocation2 + $0x16] sm:$0xff]  ;;  %v483_v14 = vadd.f32 %v1643_v46, %v1630_v20  ;;  %v360_v57 = vadd.f32 %v1654_v56, %v352_v52  ;;  %v1683_v52 = vld [vmem:[#allocation2 + $0x1f] sm:$0xff] }
  0x80   : > { %v353_v37 = vadd.f32 %v1646_v62, %v345_v10  ;;  %v1661_v53 = vld [vmem:[#allocation2 + $0x32] sm:$0xff]  ;;  %v1665_v33 = vadd.f32 %v702_v50, %v1578_v51  ;;  %v1668_v10 = vld [vmem:[#allocation2 + $0x1e] sm:$0xff] }
  0x81   : > { %v505_v12 = vadd.f32 %v497_v24, %v1489_v4  ;;  %v359_v47 = vadd.f32 %v355_v42, %v351_v8  ;;  %v1670_v29 = vld [vmem:[#allocation2 + $0x2d] sm:$0xff]  ;;  %v490_v41 = vadd.f32 %v1661_v53, %v482_v58  ;;  %v354_v34 = vadd.f32 %v1668_v10, %v346_v31  ;;  %v1687_v51 = vld [vmem:[#allocation2 + $0x3b] sm:$0xff] }
  0x82   : > { %2137 = vst [vmem:[#allocation37_spill] sm:$0xff] %v1665_v33  ;;  %2138 = vst [vmem:[#allocation38_spill] sm:$0xff] %v1670_v29  ;;  %v361_v28 = vadd.f32 %v1656_v38, %v353_v37  ;;  %v491_v24 = vadd.f32 %v1672_v7, %v483_v14  ;;  %v365_v50 = vadd.f32 %v360_v57, %v1538_v25  ;;  %v1685_v33 = vld [vmem:[#allocation2 + $0x2e] sm:$0xff] }
  0x83   : > { %v513_v8 = vadd.f32 %v505_v12, %v1670_v29  ;;  %v364_v42 = vadd.f32 %v359_v47, %v1550_v32  ;;  %v498_v37 = vadd.f32 %v1678_v63, %v490_v41  ;;  %v543_v31 = vadd.f32 %v538_v35, %v1570_v45  ;;  %v1697_v25 = vld [vmem:[#allocation2 + $0x2f] sm:$0xff] }
  0x84   : > { %v366_v58 = vadd.f32 %v361_v28, %v1568_v44  ;;  %v362_v14 = vadd.f32 %v1683_v52, %v354_v34  ;;  %v499_v12 = vadd.f32 %v1687_v51, %v491_v24  ;;  %v370_v57 = vadd.f32 %v365_v50, %v1540_v26  ;;  %v1703_v45 = vld [vmem:[#allocation2 + $0x35] sm:$0xff] }
  0x85   : > { %v521_v32 = vadd.f32 %v513_v8, %v1685_v33  ;;  %v369_v47 = vadd.f32 %v364_v42, %v1555_v36  ;;  %v506_v30 = vadd.f32 %v498_v37, %v1491_v5  ;;  %v548_v41 = vadd.f32 %v543_v31, %v1622_v60  ;;  %v1711_v37 = vld [vmem:[#allocation2 + $0x3d] sm:$0xff] }
  0x86   : > { %v371_v35 = vadd.f32 %v366_v58, %v1581_v54  ;;  %v367_v28 = vadd.f32 %v1521_v16, %v362_v14  ;;  %v507_v24 = vadd.f32 %v499_v12, %v1496_v6  ;;  %v375_v8 = vadd.f32 %v370_v57, %v1583_v55  ;;  %v1715_v14 = vld [vmem:[#allocation2 + $0x36] sm:$0xff] }
  0x87   : > { %v529_v34 = vadd.f32 %v521_v32, %v1697_v25  ;;  %v374_v36 = vadd.f32 %v369_v47, %v1575_v49  ;;  %v514_v42 = vadd.f32 %v1703_v45, %v506_v30  ;;  %v553_v50 = vadd.f32 %v548_v41, %v1489_v4  ;;  %v1723_v41 = vld [vmem:[#allocation2 + $0x3e] sm:$0xff] }
  0x88   : > { %v376_v31 = vadd.f32 %v371_v35, %v1597_v15  ;;  %v372_v58 = vadd.f32 %v1523_v17, %v367_v28  ;;  %v515_v12 = vadd.f32 %v1711_v37, %v507_v24  ;;  %v380_v47 = vadd.f32 %v375_v8, %v1599_v18  ;;  %v1727_v4 = vld [vmem:[#allocation2 + $0x37] sm:$0xff] }
  0x89   : > { %v534_v32 = vadd.f32 %v529_v34, %v1628_v11  ;;  %v379_v49 = vadd.f32 %v374_v36, %v1591_v61  ;;  %v522_v30 = vadd.f32 %v1715_v14, %v514_v42  ;;  %v558_v57 = vadd.f32 %v553_v50, %v1670_v29  ;;  %v1735_v50 = vld [vmem:[#allocation2 + $0x3f] sm:$0xff] }
  0x8a   : > { %v381_v35 = vadd.f32 %v376_v31, %v1614_v48  ;;  %v377_v28 = vadd.f32 %v1527_v19, %v372_v58  ;;  %v523_v24 = vadd.f32 %v1723_v41, %v515_v12  ;;  %v385_v36 = vadd.f32 %v380_v47, %v1480_v1 }
  0x8b   : > { %v539_v34 = vadd.f32 %v534_v32, %v1641_v43  ;;  %v384_v61 = vadd.f32 %v379_v49, %v1478_v0  ;;  %v530_v8 = vadd.f32 %v1727_v4, %v522_v30  ;;  %v563_v42 = vadd.f32 %v558_v57, %v1685_v33 }
  0x8c   : > { %v382_v31 = vadd.f32 %v1534_v23, %v377_v28  ;;  %v386_v58 = vadd.f32 %v381_v35, %v1482_v2  ;;  %v531_v32 = vadd.f32 %v1735_v50, %v523_v24  ;;  %v390_v49 = vadd.f32 %v385_v36, %v1625_v13 }
  0x8d   : > { %v544_v29 = vadd.f32 %v539_v34, %v1661_v53  ;;  %v389_v12 = vadd.f32 %v384_v61, %v1620_v59  ;;  %v535_v47 = vadd.f32 %v530_v8, %v1630_v20  ;;  %v568_v30 = vadd.f32 %v563_v42, %v1697_v25 }
  0x8e   : > { %v391_v57 = vadd.f32 %v386_v58, %v1649_v27  ;;  %v387_v0 = vadd.f32 %v382_v31, %v1487_v3  ;;  %v536_v35 = vadd.f32 %v1530_v21, %v531_v32  ;;  %v395_v24 = vadd.f32 %v390_v49, %v1646_v62 }
  0x8f   : > { %v549_v28 = vadd.f32 %v544_v29, %v1678_v63  ;;  %v394_v34 = vadd.f32 %v389_v12, %v1638_v9  ;;  %v540_v59 = vadd.f32 %v535_v47, %v1643_v46  ;;  %v573_v61 = vadd.f32 %v568_v30, %v1628_v11  ;;  %v2139_v30 = vld [vmem:[#allocation26_spill] sm:$0xff] }
  0x90   : > { %v396_v36 = vadd.f32 %v391_v57, %v1668_v10  ;;  %v392_v8 = vadd.f32 %v1561_v39, %v387_v0  ;;  %v541_v31 = vadd.f32 %v1532_v22, %v536_v35  ;;  %v400_v58 = vadd.f32 %v395_v24, %v1656_v38  ;;  %v2140_v57 = vld [vmem:[#allocation23_spill] sm:$0xff] }
  0x91   : > { %v554_v42 = vadd.f32 %v549_v28, %v1491_v5  ;;  %v399_v29 = vadd.f32 %v394_v34, %v1654_v56  ;;  %v545_v9 = vadd.f32 %v540_v59, %v1672_v7  ;;  %v578_v32 = vadd.f32 %v573_v61, %v1641_v43  ;;  %v2141_v59 = vld [vmem:[#allocation32_spill] sm:$0xff] }
  0x92   : > { %v401_v12 = vadd.f32 %v396_v36, %v1683_v52  ;;  %v397_v49 = vadd.f32 %v1563_v40, %v392_v8  ;;  %v546_v0 = vadd.f32 %v2139_v30, %v541_v31  ;;  %v405_v35 = vadd.f32 %v400_v58, %v1568_v44  ;;  %v2142_v36 = vld [vmem:[#allocation27_spill] sm:$0xff] }
  0x93   : > { %v559_v47 = vadd.f32 %v554_v42, %v1703_v45  ;;  %v404_v28 = vadd.f32 %v399_v29, %v2140_v57  ;;  %v550_v56 = vadd.f32 %v545_v9, %v1687_v51  ;;  %v583_v34 = vadd.f32 %v578_v32, %v1661_v53  ;;  %v2143_v57 = vld [vmem:[#allocation24_spill] sm:$0xff] }
  0x94   : > { %v406_v24 = vadd.f32 %v1521_v16, %v401_v12  ;;  %v402_v43 = vadd.f32 %v2141_v59, %v397_v49  ;;  %v551_v8 = vadd.f32 %v2142_v36, %v546_v0  ;;  %v410_v31 = vadd.f32 %v405_v35, %v1581_v54  ;;  %v2144_v12 = vld [vmem:[#allocation17_spill] sm:$0xff] }
  0x95   : > { %v564_v61 = vadd.f32 %v559_v47, %v1715_v14  ;;  %v409_v42 = vadd.f32 %v404_v28, %v1540_v26  ;;  %v588_v29 = vadd.f32 %v583_v34, %v1678_v63  ;;  %v555_v58 = vadd.f32 %v550_v56, %v1496_v6  ;;  %v2145_v28 = vld [vmem:[#allocation25_spill] sm:$0xff]  ;;  %v2146_v56 = vld [vmem:[#allocation31_spill] sm:$0xff] }
  0x96   : > { %v411_v9 = vadd.f32 %v1523_v17, %v406_v24  ;;  %v407_v53 = vadd.f32 %v2143_v57, %v402_v43  ;;  %v556_v49 = vadd.f32 %v551_v8, %v2144_v12  ;;  %v415_v0 = vadd.f32 %v410_v31, %v1597_v15  ;;  %v2148_v31 = vld [vmem:[#allocation33_spill] sm:$0xff] }
  0x97   : > { %v569_v32 = vadd.f32 %v564_v61, %v1727_v4  ;;  %v414_v47 = vadd.f32 %v409_v42, %v1583_v55  ;;  %v593_v26 = vadd.f32 %v588_v29, %v1491_v5  ;;  %v560_v54 = vadd.f32 %v555_v58, %v1711_v37  ;;  %v2147_v61 = vld [vmem:[#allocation28_spill] sm:$0xff] }
  0x98   : > { %v416_v63 = vadd.f32 %v1527_v19, %v411_v9  ;;  %v412_v35 = vadd.f32 %v2145_v28, %v407_v53  ;;  %v561_v34 = vadd.f32 %v2146_v56, %v556_v49  ;;  %v420_v43 = vadd.f32 %v415_v0, %v1614_v48  ;;  %v2149_v49 = vld [vmem:[#allocation35_spill] sm:$0xff]  ;;  %v2151_v28 = vld [vmem:[#allocation29_spill] sm:$0xff] }
  0x99   : > { %v574_v17 = vadd.f32 %v569_v32, %v1630_v20  ;;  %v419_v24 = vadd.f32 %v414_v47, %v1599_v18  ;;  %v598_v55 = vadd.f32 %v593_v26, %v1703_v45  ;;  %v565_v15 = vadd.f32 %v560_v54, %v1723_v41  ;;  %v2150_v54 = vld [vmem:[#allocation16_spill] sm:$0xff] }
  0x9a   : > { %v417_v8 = vadd.f32 %v2147_v61, %v412_v35  ;;  %v421_v42 = vadd.f32 %v1534_v23, %v416_v63  ;;  %v566_v29 = vadd.f32 %v2148_v31, %v561_v34  ;;  %v425_v9 = vadd.f32 %v420_v43, %v1482_v2  ;;  %v2152_v34 = vld [vmem:[#allocation38_spill] sm:$0xff] }
  0x9b   : > { %v579_v19 = vadd.f32 %v574_v17, %v1643_v46  ;;  %v424_v58 = vadd.f32 %v419_v24, %v1480_v1  ;;  %v603_v18 = vadd.f32 %v598_v55, %v1715_v14  ;;  %v570_v48 = vadd.f32 %v565_v15, %v1735_v50  ;;  %v2153_v43 = vld [vmem:[#allocation30_spill] sm:$0xff]  ;;  %v1823_v15 = vld [vmem:[#allocation2 + $0x51] sm:$0xff] }
  0x9c   : > { %v422_v45 = vadd.f32 %v1622_v60, %v417_v8  ;;  %v426_v53 = vadd.f32 %v421_v42, %v1487_v3  ;;  %v571_v23 = vadd.f32 %v2149_v49, %v566_v29  ;;  %v430_v47 = vadd.f32 %v425_v9, %v1649_v27  ;;  %v2154_v42 = vld [vmem:[#allocation34_spill] sm:$0xff]  ;;  %v1834_v29 = vld [vmem:[#allocation2 + $0x58] sm:$0xff] }
  0x9d   : > { %v584_v32 = vadd.f32 %v579_v19, %v1672_v7  ;;  %v429_v46 = vadd.f32 %v424_v58, %v1625_v13  ;;  %v608_v0 = vadd.f32 %v603_v18, %v1727_v4  ;;  %v575_v26 = vadd.f32 %v1530_v21, %v570_v48  ;;  %v1836_v58 = vld [vmem:[#allocation2 + $0x59] sm:$0xff] }
  0x9e   : > { %v431_v14 = vadd.f32 %v1561_v39, %v426_v53  ;;  %v427_v63 = vadd.f32 %v422_v45, %v2150_v54  ;;  %v576_v35 = vadd.f32 %v2151_v28, %v571_v23  ;;  %v435_v17 = vadd.f32 %v430_v47, %v1668_v10  ;;  %v1857_v47 = vld [vmem:[#allocation2 + $0x52] sm:$0xff] }
  0x9f   : > { %v589_v60 = vadd.f32 %v584_v32, %v1687_v51  ;;  %v434_v7 = vadd.f32 %v429_v46, %v1646_v62  ;;  %v613_v13 = vadd.f32 %v608_v0, %v1630_v20  ;;  %v580_v27 = vadd.f32 %v1532_v22, %v575_v26  ;;  %v1821_v51 = vld [vmem:[#allocation2 + $0x50] sm:$0xff]  ;;  %v2155_v46 = vld [vmem:[#allocation18_spill] sm:$0xff] }
  0xa0   : > { %v436_v4 = vadd.f32 %v1563_v40, %v431_v14  ;;  %v432_v24 = vadd.f32 %v2152_v34, %v427_v63  ;;  %v581_v55 = vadd.f32 %v2153_v43, %v576_v35  ;;  %v440_v10 = vadd.f32 %v435_v17, %v1683_v52  ;;  %v597_v0 = vld [vmem:[#allocation2 + $0x4d] sm:$0xff]  ;;  %v2157_v17 = vld [vmem:[#allocation37_spill] sm:$0xff] }
  0xa1   : > { %v594_v39 = vadd.f32 %v589_v60, %v1496_v6  ;;  %v439_v62 = vadd.f32 %v434_v7, %v1656_v38  ;;  %v1827_v20 = vmul.f32 0.04, %v613_v13  ;;  %v585_v22 = vadd.f32 %v2139_v30, %v580_v27  ;;  %v587_v30 = vld [vmem:[#allocation2 + $0x4b] sm:$0xff]  ;;  %v1869_v7 = vld [vmem:[#allocation2 + $0x53] sm:$0xff]  ;;  %v1873_v27 = vld [vmem:[#allocation2 + $0x5b] sm:$0xff] }
  0xa2   : > { %v441_v40 = vadd.f32 %v2141_v59, %v436_v4  ;;  %v437_v61 = vadd.f32 %v1685_v33, %v432_v24  ;;  %v586_v19 = vadd.f32 %v2154_v42, %v581_v55  ;;  %v445_v52 = vadd.f32 %v1521_v16, %v440_v10  ;;  %v2156_v63 = vld [vmem:[#allocation36_spill] sm:$0xff] }
  0xa3   : > { %v599_v8 = vadd.f32 %v594_v39, %v1711_v37  ;;  %v444_v38 = vadd.f32 %v439_v62, %v1568_v44  ;;  %621 = vst [vmem:[%s1841_s24 + $0x20] sm:$0xff] %v1827_v20  ;;  %v590_v33 = vadd.f32 %v2142_v36, %v585_v22  ;;  %v651_v37 = vadd.f32 %v1823_v15, %v1821_v51  ;;  %v602_v4 = vld [vmem:[#allocation2 + $0x4e] sm:$0xff] }
  0xa4   : > { %v446_v59 = vadd.f32 %v2143_v57, %v441_v40  ;;  %v442_v9 = vadd.f32 %v1697_v25, %v437_v61  ;;  %v591_v16 = vadd.f32 %v587_v30, %v586_v19  ;;  %v449_v48 = vmul.f32 0.04, %v445_v52  ;;  %v1859_v25 = vld [vmem:[#allocation2 + $0x5a] sm:$0xff]  ;;  %v2158_v62 = vld [vmem:[#allocation15_spill] sm:$0xff] }
  0xa5   : > { %v604_v44 = vadd.f32 %v599_v8, %v1723_v41  ;;  %v448_v18 = vmul.f32 0.04, %v444_v38  ;;  %v595_v45 = vadd.f32 %v590_v33, %v2144_v12  ;;  %v652_v36 = vadd.f32 %v1836_v58, %v1834_v29  ;;  %v607_v40 = vld [vmem:[#allocation2 + $0x4f] sm:$0xff] }
  0xa6   : > { %v450_v53 = vmul.f32 0.04, %v446_v59  ;;  %v447_v32 = vadd.f32 %v1628_v11, %v442_v9  ;;  %v596_v57 = vadd.f32 %v591_v16, %v2155_v46  ;;  %453 = vst [vmem:[%s1841_s24 + $0x8] sm:$0xff] %v449_v48  ;;  %v659_v26 = vadd.f32 %v1857_v47, %v651_v37  ;;  %v2159_v61 = vld [vmem:[#allocation19_spill] sm:$0xff]  ;;  %v1885_v52 = vld [vmem:[#allocation2 + $0x55] sm:$0xff]  ;;  %v1888_v37 = vld [vmem:[#allocation2 + $0x5d] sm:$0xff] }
  0xa7   : > { %v609_v23 = vadd.f32 %v604_v44, %v1735_v50  ;;  %452 = vst [vmem:[%s1841_s24] sm:$0xff] %v448_v18  ;;  %v600_v41 = vadd.f32 %v2146_v56, %v595_v45  ;;  %v660_v14 = vadd.f32 %v1859_v25, %v652_v36  ;;  %v666_v11 = vadd.f32 %v2156_v63, %v587_v30  ;;  %v687_v45 = vld [vmem:[#allocation2 + $0x56] sm:$0xff] }
  0xa8   : > { %454 = vst [vmem:[%s1841_s24 + $0x10] sm:$0xff] %v450_v53  ;;  %v451_v50 = vmul.f32 0.04, %v447_v32  ;;  %v601_v35 = vadd.f32 %v597_v0, %v596_v57  ;;  %v712_v13 = vadd.f32 %v2157_v17, %v2154_v42  ;;  %v667_v34 = vadd.f32 %v1869_v7, %v659_v26  ;;  %v2160_v42 = vld [vmem:[#allocation20_spill] sm:$0xff]  ;;  %v1900_v32 = vld [vmem:[#allocation2 + $0x5e] sm:$0xff] }
  0xa9   : > { %v614_v60 = vadd.f32 %v1530_v21, %v609_v23  ;;  %v605_v56 = vadd.f32 %v2148_v31, %v600_v41  ;;  %v674_v24 = vadd.f32 %v666_v11, %v2155_v46  ;;  %v668_v39 = vadd.f32 %v1873_v27, %v660_v14  ;;  %v695_v41 = vld [vmem:[#allocation2 + $0x57] sm:$0xff]  ;;  %v1908_v26 = vld [vmem:[#allocation2 + $0x5f] sm:$0xff] }
  0xaa   : > { %455 = vst [vmem:[%s1841_s24 + $0x18] sm:$0xff] %v451_v50  ;;  %v606_v43 = vadd.f32 %v602_v4, %v601_v35  ;;  %v717_v55 = vadd.f32 %v712_v13, %v587_v30  ;;  %v460_v10 = vsub.f32 %v2158_v62, %v448_v18  ;;  %v675_v8 = vadd.f32 %v667_v34, %v2159_v61  ;;  %v716_v62 = vld [vmem:[#allocation2 + $0x63] sm:$0xff] }
  0xab   : > { %v618_v21 = vmul.f32 0.04, %v614_v60  ;;  %v610_v22 = vadd.f32 %v2149_v49, %v605_v56  ;;  %v682_v31 = vadd.f32 %v674_v24, %v597_v0  ;;  %v676_v19 = vadd.f32 %v668_v39, %v2160_v42  ;;  %v706_v56 = vld [vmem:[#allocation2 + $0x61] sm:$0xff] }
  0xac   : > { %v611_v38 = vadd.f32 %v607_v40, %v606_v43  ;;  %v722_v33 = vadd.f32 %v717_v55, %v2155_v46  ;;  %464 = vst [vmem:[%s1891_s19] sm:$0xff] %v460_v10  ;;  %v461_v49 = vsub.f32 %v1480_v1, %v449_v48  ;;  %v462_v30 = vsub.f32 %v1482_v2, %v450_v53  ;;  %v711_v39 = vld [vmem:[#allocation2 + $0x62] sm:$0xff] }
  0xad   : > { %622 = vst [vmem:[%s1841_s24 + $0x28] sm:$0xff] %v618_v21  ;;  %v615_v59 = vadd.f32 %v2151_v28, %v610_v22  ;;  %v683_v9 = vadd.f32 %v1885_v52, %v675_v8  ;;  %v690_v44 = vadd.f32 %v682_v31, %v602_v4  ;;  %v684_v16 = vadd.f32 %v1888_v37, %v676_v19  ;;  %v2161_v31 = vld [vmem:[#allocation21_spill] sm:$0xff] }
  0xae   : > { %v616_v18 = vadd.f32 %v1821_v51, %v611_v38  ;;  %v727_v36 = vadd.f32 %v722_v33, %v597_v0  ;;  %465 = vst [vmem:[%s1891_s19 + $0x8] sm:$0xff] %v461_v49  ;;  %466 = vst [vmem:[%s1891_s19 + $0x10] sm:$0xff] %v462_v30  ;;  %v463_v1 = vsub.f32 %v1487_v3, %v451_v50  ;;  %v1918_v50 = vld [vmem:[#allocation2 + $0x60] sm:$0xff] }
  0xaf   : > { %v629_v2 = vsub.f32 %v2150_v54, %v1827_v20  ;;  %v619_v28 = vmul.f32 0.04, %v615_v59  ;;  %v691_v48 = vadd.f32 %v687_v45, %v683_v9  ;;  %v698_v53 = vadd.f32 %v690_v44, %v607_v40  ;;  %v726_v33 = vld [vmem:[#allocation2 + $0x65] sm:$0xff] }
  0xb0   : > { %v692_v23 = vadd.f32 %v1900_v32, %v684_v16  ;;  %v620_v57 = vmul.f32 0.04, %v616_v18  ;;  %v732_v0 = vadd.f32 %v727_v36, %v602_v4  ;;  %467 = vst [vmem:[%s1891_s19 + $0x18] sm:$0xff] %v463_v1  ;;  %v630_v3 = vsub.f32 %v1491_v5, %v618_v21  ;;  %v731_v9 = vld [vmem:[#allocation2 + $0x66] sm:$0xff] }
  0xb1   : > { %633 = vst [vmem:[%s1891_s19 + $0x20] sm:$0xff] %v629_v2  ;;  %623 = vst [vmem:[%s1841_s24 + $0x30] sm:$0xff] %v619_v28  ;;  %v699_v54 = vadd.f32 %v695_v41, %v691_v48  ;;  %v703_v20 = vadd.f32 %v698_v53, %v1821_v51  ;;  %v631_v63 = vsub.f32 %v1496_v6, %v619_v28  ;;  %v736_v36 = vld [vmem:[#allocation2 + $0x67] sm:$0xff] }
  0xb2   : > { %v700_v14 = vadd.f32 %v1908_v26, %v692_v23  ;;  %624 = vst [vmem:[%s1841_s24 + $0x38] sm:$0xff] %v620_v57  ;;  %v737_v11 = vadd.f32 %v732_v0, %v607_v40  ;;  %634 = vst [vmem:[%s1891_s19 + $0x28] sm:$0xff] %v630_v3  ;;  %v632_v60 = vsub.f32 %v2144_v12, %v620_v57  ;;  %v741_v53 = vld [vmem:[#allocation2 + $0x68] sm:$0xff] }
  0xb3   : > { %v704_v35 = vadd.f32 %v699_v54, %v1834_v29  ;;  %v708_v5 = vadd.f32 %v703_v20, %v1823_v15  ;;  %635 = vst [vmem:[%s1891_s19 + $0x30] sm:$0xff] %v631_v63  ;;  %v746_v3 = vld [vmem:[#allocation2 + $0x69] sm:$0xff] }
  0xb4   : > { %v705_v17 = vadd.f32 %v1918_v50, %v700_v14  ;;  %v742_v13 = vadd.f32 %v737_v11, %v1821_v51  ;;  %636 = vst [vmem:[%s1891_s19 + $0x38] sm:$0xff] %v632_v60  ;;  %v751_v63 = vld [vmem:[#allocation2 + $0x6a] sm:$0xff] }
  0xb5   : > { %v709_v6 = vadd.f32 %v704_v35, %v1836_v58  ;;  %v713_v4 = vadd.f32 %v708_v5, %v1857_v47  ;;  %v756_v35 = vld [vmem:[#allocation2 + $0x6b] sm:$0xff] }
  0xb6   : > { %v710_v34 = vadd.f32 %v706_v56, %v705_v17  ;;  %v747_v24 = vadd.f32 %v742_v13, %v1823_v15 }
  0xb7   : > { %v714_v12 = vadd.f32 %v709_v6, %v1859_v25  ;;  %v718_v21 = vadd.f32 %v713_v4, %v1869_v7 }
  0xb8   : > { %v715_v43 = vadd.f32 %v711_v39, %v710_v34  ;;  %v752_v55 = vadd.f32 %v747_v24, %v1857_v47 }
  0xb9   : > { %v723_v51 = vadd.f32 %v718_v21, %v2159_v61  ;;  %v719_v10 = vadd.f32 %v714_v12, %v1873_v27 }
  0xba   : > { %v720_v22 = vadd.f32 %v716_v62, %v715_v43  ;;  %v757_v40 = vadd.f32 %v752_v55, %v1869_v7  ;;  %v776_v43 = vld [vmem:[#allocation2 + $0x6f] sm:$0xff] }
  0xbb   : > { %v728_v8 = vadd.f32 %v723_v51, %v1885_v52  ;;  %v724_v15 = vadd.f32 %v719_v10, %v2160_v42  ;;  %v784_v51 = vld [vmem:[#allocation2 + $0x70] sm:$0xff] }
  0xbc   : > { %v725_v19 = vadd.f32 %v720_v22, %v2161_v31  ;;  %v762_v38 = vadd.f32 %v757_v40, %v2159_v61 }
  0xbd   : > { %v733_v49 = vadd.f32 %v728_v8, %v687_v45  ;;  %v729_v47 = vadd.f32 %v724_v15, %v1888_v37 }
  0xbe   : > { %v730_v30 = vadd.f32 %v726_v33, %v725_v19  ;;  %v767_v59 = vadd.f32 %v762_v38, %v1885_v52 }
  0xbf   : > { %v738_v44 = vadd.f32 %v733_v49, %v695_v41  ;;  %v734_v16 = vadd.f32 %v729_v47, %v1900_v32 }
  0xc0   : > { %v735_v7 = vadd.f32 %v731_v9, %v730_v30  ;;  %v772_v18 = vadd.f32 %v767_v59, %v687_v45 }
  0xc1   : > { %v743_v1 = vadd.f32 %v738_v44, %v1834_v29  ;;  %v739_v2 = vadd.f32 %v734_v16, %v1908_v26 }
  0xc2   : > { %v740_v28 = vadd.f32 %v736_v36, %v735_v7  ;;  %v777_v48 = vadd.f32 %v772_v18, %v695_v41 }
  0xc3   : > { %v748_v23 = vadd.f32 %v743_v1, %v1836_v58  ;;  %v744_v57 = vadd.f32 %v739_v2, %v1918_v50 }
  0xc4   : > { %v745_v52 = vadd.f32 %v741_v53, %v740_v28  ;;  %v785_v0 = vadd.f32 %v777_v48, %v1834_v29 }
  0xc5   : > { %v749_v54 = vadd.f32 %v744_v57, %v706_v56  ;;  %v753_v45 = vadd.f32 %v748_v23, %v1859_v25  ;;  %v2162_v56 = vld [vmem:[#allocation22_spill] sm:$0xff] }
  0xc6   : > { %v750_v20 = vadd.f32 %v746_v3, %v745_v52  ;;  %v789_v14 = vmul.f32 0.04, %v785_v0 }
  0xc7   : > { %v758_v11 = vadd.f32 %v753_v45, %v1873_v27  ;;  %v754_v60 = vadd.f32 %v749_v54, %v711_v39  ;;  %v766_v27 = vld [vmem:[#allocation2 + $0x6d] sm:$0xff] }
  0xc8   : > { %v755_v41 = vadd.f32 %v751_v63, %v750_v20  ;;  %793 = vst [vmem:[%s1841_s24 + $0x40] sm:$0xff] %v789_v14  ;;  %v801_v58 = vsub.f32 %v2155_v46, %v789_v14  ;;  %v771_v46 = vld [vmem:[#allocation2 + $0x6e] sm:$0xff] }
  0xc9   : > { %v763_v5 = vadd.f32 %v758_v11, %v2160_v42  ;;  %v759_v17 = vadd.f32 %v754_v60, %v716_v62 }
  0xca   : > { %v760_v29 = vadd.f32 %v756_v35, %v755_v41  ;;  %805 = vst [vmem:[%s1891_s19 + $0x40] sm:$0xff] %v801_v58 }
  0xcb   : > { %v768_v13 = vadd.f32 %v763_v5, %v1888_v37  ;;  %v764_v25 = vadd.f32 %v759_v17, %v2161_v31 }
  0xcc   : > { %v765_v6 = vadd.f32 %v760_v29, %v2162_v56 }
  0xcd   : > { %v773_v4 = vadd.f32 %v768_v13, %v1900_v32  ;;  %v769_v34 = vadd.f32 %v764_v25, %v726_v33 }
  0xce   : > { %v770_v24 = vadd.f32 %v766_v27, %v765_v6 }
  0xcf   : > { %v778_v39 = vadd.f32 %v773_v4, %v1908_v26  ;;  %v774_v12 = vadd.f32 %v769_v34, %v731_v9 }
  0xd0   : > { %v775_v21 = vadd.f32 %v771_v46, %v770_v24 }
  0xd1   : > { %v786_v37 = vadd.f32 %v778_v39, %v1918_v50  ;;  %v779_v55 = vadd.f32 %v774_v12, %v736_v36 }
  0xd2   : > { %v780_v62 = vadd.f32 %v776_v43, %v775_v21 }
  0xd3   : > { %v790_v32 = vmul.f32 0.04, %v786_v37  ;;  %v787_v10 = vadd.f32 %v779_v55, %v741_v53 }
  0xd4   : > { %v788_v22 = vadd.f32 %v784_v51, %v780_v62 }
  0xd5   : > { %794 = vst [vmem:[%s1841_s24 + $0x48] sm:$0xff] %v790_v32  ;;  %v791_v26 = vmul.f32 0.04, %v787_v10  ;;  %v802_v8 = vsub.f32 %v2159_v61, %v790_v32 }
  0xd6   : > { %v792_v40 = vmul.f32 0.04, %v788_v22 }
  0xd7   : > { %795 = vst [vmem:[%s1841_s24 + $0x50] sm:$0xff] %v791_v26  ;;  %806 = vst [vmem:[%s1891_s19 + $0x48] sm:$0xff] %v802_v8  ;;  %v803_v50 = vsub.f32 %v2160_v42, %v791_v26 }
  0xd8   : > { %796 = vst [vmem:[%s1841_s24 + $0x58] sm:$0xff] %v792_v40  ;;  %v804_v15 = vsub.f32 %v2161_v31, %v792_v40 }
  0xd9   : > { %1162 = shalt.err (!%p1159_p11)
}
  0xda   : > { %s1163_s11 = scalar_lea.hbm %s1969_s30, 1536  ;;  %s1167_s23 = scalar_lea.hbm %s2067_s3, 3072 }
  0xdb   : > { %p1164_p1 = scmp.ne.s32.totalorder %s1969_s30, %s1163_s11  ;;  %p1168_p4 = scmp.lt.u32.totalorder %s1969_s30, %s2067_s3 }
  0xdc   : > { %p1169_p6 = scmp.lt.u32.totalorder %s1167_s23, %s1163_s11  ;;  %p1171_p0 = scmp.lt.u32.totalorder %s1163_s11, %s1969_s30 }
  0xdd   : > { %p1165_p5 = pnand %p1164_p1, %p2163_p3 }
  0xde   : > { %p1170_p8 = por %p1169_p6, %p1168_p4 }
  0xdf   : > { %p1166_p2 = pneg %p1165_p5 }
  0xe0   : > { %p1172_p12 = por %p1171_p0, %p1170_p8 }
  0xe2   : > { %p1173_p13 = pnand %p1172_p12, %p1166_p2 }
  0xe4   : > { %1176 = shalt.err (!%p1173_p13)
}
  0xe5   : > { %s1274_s10 = smov 128   ;;  %s1275_s4 = smov 8   ;;  %807 = vst [vmem:[%s1891_s19 + $0x50] sm:$0xff] %v803_v50  ;;  %808 = vst [vmem:[%s1891_s19 + $0x58] sm:$0xff] %v804_v15 }
  0xe6   : > { %1018 = dma.vmem_to_hbm [thread:$0]  (%p2163_p3), %s1971_s5, 1536, %s1969_s30, %s815_s21, %s1274_s10, %s1274_s10, %s1275_s4  }
  0xe7   : > { %s810_s22 = scalar_lea.sflag [#allocation5], %s1459_s9  ;;  %s1177_s28 = scalar_lea.vmem %s1983_s7, 1536 }
  0xe8   : > { %p1178_p7 = scmp.ne.s32.totalorder %s1983_s7, %s1177_s28  ;;  %s1276_s8 = smov [#allocation8]  }
  0xe9   : > { %s1181_s11 = sshll.u32 %s1276_s8, 4  ;;  %s1182_s11 = int_to_ptr.vmem [resolvable:$false] %s1181_s11 }
  0xea   : > { %p1179_p10 = pnand %p1178_p7, %p2163_p3  ;;  %s1183_s24 = scalar_lea.vmem %s1182_s11, 3072 }
  0xeb   : > { %p1184_p11 = scmp.lt.s32.totalorder %s1983_s7, %s1182_s11  ;;  %p1185_p1 = scmp.lt.s32.totalorder %s1183_s24, %s1177_s28 }
  0xec   : > { %p1180_p9 = pneg %p1179_p10 }
  0xed   : > { %p1186_p5 = por %p1185_p1, %p1184_p11 }
  0xef   : > { %p1187_p2 = pnand %p1186_p5, %p1180_p9 }
  0xf1   : > { %1190 = shalt.err (!%p1187_p2)
}
  0xf2   : > { %s1191_s19 = scalar_lea.hbm %s1981_s6, 1536  ;;  %s1195_s21 = scalar_lea.hbm %s2066_s2, 3072 }
  0xf3   : > { %p1192_p4 = scmp.ne.s32.totalorder %s1981_s6, %s1191_s19  ;;  %p1196_p0 = scmp.lt.u32.totalorder %s1981_s6, %s2066_s2 }
  0xf4   : > { %p1197_p12 = scmp.lt.u32.totalorder %s1195_s21, %s1191_s19  ;;  %p1199_p7 = scmp.lt.u32.totalorder %s1191_s19, %s1981_s6 }
  0xf5   : > { %p1193_p6 = pnand %p1192_p4, %p2163_p3 }
  0xf6   : > { %p1198_p13 = por %p1197_p12, %p1196_p0 }
  0xf7   : > { %p1194_p8 = pneg %p1193_p6 }
  0xf8   : > { %p1200_p10 = por %p1199_p7, %p1198_p13 }
  0xfa   : > { %p1201_p9 = pnand %p1200_p10, %p1194_p8 }
  0xfc   : > { %1204 = shalt.err (!%p1201_p9)
}
  0xfd   : > { %1017 = dma.vmem_to_hbm [thread:$0]  (%p2163_p3), %s1983_s7, 1536, %s1981_s6, %s810_s22, %s1274_s10, %s1274_s10, %s1275_s4  }
  0xfe PF: > { %s863_s18 = sand.u32 1, %s1247_s12   ;;  %p2164_p11 = scmp.ne.s32.totalorder %s2110_s27, 0 }
  0xff   : > { %p2165_p1 = scmp.ge.s32.totalorder %s1267_s17, 2  ;;  %s864_s15 = scalar_lea.sflag [#allocation5], %s863_s18 }
 0x101   : > { %p1029_p5 = pnand %p2165_p1, %p2164_p11 }
 0x103   : > { %1238 = dma.done.wait (!%p1029_p5), %s864_s15, 1536  }
 0x104   : > { %1240 = vsyncadd (!%p1029_p5), %s864_s15, 4294965760  ;;  %s873_s25 = scalar_lea.sflag [#allocation10], %s863_s18 }
 0x105   : > { %1242 = dma.done.wait (!%p1029_p5), %s873_s25, 1536  }
 0x106   : > { %1244 = vsyncadd (!%p1029_p5), %s873_s25, 4294965760  ;;  %s26_s17 = sadd.s32 1, %s1267_s17   ;;  %s2166_s12 = smov %s1251_s13 }
 0x107   : > { %p23_p2 = scmp.ge.s32.totalorder %s26_s17, 4   ;;  %s2167_s13 = smov %s1255_s14 }
 0x108   : > { %s2168_s14 = smov %s1353_s26  ;;  %s2169_s15 = smov %s1263_s16 }
 0x109   : > { %s2170_s16 = smov %s2172_s20  ;;  %25 = sbr.rel (!%p23_p2) target bundleno = 10 (0xa), region = 103 }
 0x110   :  { %878 = vsyncpa [#allocation4], 1 }
 0x111   :  { %880 = vsyncpa [#allocation4 + $0x1], 1 }
 0x112   :  { %881 = vsyncpa [#allocation7], 1 }
 0x113   :  { %883 = vsyncpa [#allocation7 + $0x1], 1 }
 0x114   :  { %884 = vsyncpa [#allocation5], 1 }
 0x115   :  { %886 = vsyncpa [#allocation5 + $0x1], 1 }
 0x116   :  { %887 = vsyncpa [#allocation10], 1 }
 0x117   :  { %889 = vsyncpa [#allocation10 + $0x1], 1 }

</bundles_post_ra>
